<compile_context>
chip_gen: v7x
topology: tpu7x:2x2x1
jax: 0.10.0
libtpu: 0.0.40
codegen_flags: <defaults>
</compile_context>

<pallas_src>
import math

import jax
import jax.numpy as jnp
import numpy as np
from jax import lax
from jax.experimental import pallas as pl
from jax.experimental.pallas import tpu as pltpu

_LANE = 128
_INV_SQRT2 = np.float32(1.0 / math.sqrt(2.0))

# Can we single-buffer the grid-invariant (resident) operands?
try:
    pl.BlockSpec((8, 128), lambda i: (0, 0), pipeline_mode=pl.Buffered(1))
    _SINGLE_BUFFER_WEIGHTS = True
except Exception:  # older BlockSpec without pipeline_mode / Buffered
    _SINGLE_BUFFER_WEIGHTS = False


def _round_up(v, m):
    return (v + m - 1) // m * m


def _itemsize(dt):
    return jnp.dtype(dt).itemsize


def _vmem_budget_bytes():
    """~80% of this generation's VMEM (v5e/v6e: 128 MiB, v7x: 64 MiB per TC)."""
    try:
        cap = int(pltpu.get_tpu_info().vmem_capacity_bytes)
    except Exception:
        cap = 64 << 20  # conservative fallback (v7x per-TensorCore)
    return int(0.80 * cap)


def _footprint_bytes(t, c1p, c2p, x_bytes, out_bytes, cdt_bytes, w_buffers):
    """Per-call VMEM footprint estimate for a (t, c1p) token tile."""
    weights = (2 * c1p * c2p * cdt_bytes + (c1p + c2p) * 4) * w_buffers
    stream = 2 * t * c1p * (x_bytes + out_bytes)            # double-buffered x / out
    temps = 3 * t * c2p * 4 + 2 * t * c1p * 4               # f32 h, a, out accum
    temps += t * (c1p + c2p) * cdt_bytes                    # compute-dtype matmul copies
    return weights + stream + temps + (2 << 20)             # Mosaic internal scratch


def _pick_tn(T, c1p, c2p, x_bytes, out_bytes, cdt_bytes, w_buffers, budget, min_rows):
    for cand in (4096, 2048, 1024, 512, 256, 128, 64, 32, 16, 8):
        if cand < min_rows or cand > T:
            continue
        if T % cand == 0 and _footprint_bytes(
                cand, c1p, c2p, x_bytes, out_bytes, cdt_bytes, w_buffers) <= budget:
            return cand
    return T  # tiny T (single full block) or forced fallback


def mlp_ffn_kernel(x_ref, w1_ref, b1_ref, w2_ref, b2_ref, o_ref):
    """One (TN, C1p) token tile: fc1 -> exact GELU -> fc2 (lane-padded channels)."""
    cdt = w1_ref.dtype
    # fc1 on the MXU: compute-dtype operands (bf16 by default), f32 accumulation.
    h = jnp.dot(x_ref[...].astype(cdt), w1_ref[...],
                preferred_element_type=jnp.float32)
    h = h + b1_ref[...].astype(jnp.float32)
    # Exact (erf) GELU in f32 — matches PyTorch nn.GELU() default.
    a = 0.5 * h * (1.0 + lax.erf(h * _INV_SQRT2))
    # fc2 on the MXU, f32 accumulation, f32 bias.
    out = jnp.dot(a.astype(cdt), w2_ref[...], preferred_element_type=jnp.float32)
    out = out + b2_ref[...].astype(jnp.float32)
    o_ref[...] = out.astype(o_ref.dtype)


def mlp_ffn_forward(x, params, *, compute_dtype=jnp.bfloat16, tn=None,
                    keep_padded=False):
    """x: (B, N, c1) -> (B, N, c1) = fc2(gelu(fc1(x))).

    compute_dtype: dtype of the MXU operands (weights + activations);
    accumulation is always f32 and biases are applied in f32.  Use
    jnp.float32 for exact (reference-matching) numerics.
    """
    B, N, C1 = x.shape
    C2 = params["w1"].shape[1]
    assert params["w1"].shape == (C1, C2)
    assert params["w2"].shape == (C2, C1)

    cdt = jnp.dtype(compute_dtype)
    out_dtype = x.dtype
    T = B * N
    C1p = _round_up(C1, _LANE)
    C2p = _round_up(C2, _LANE)

    # ---- weights: cast to compute dtype, zero-pad channels to lane multiples.
    w1 = jnp.pad(params["w1"].astype(cdt), ((0, C1p - C1), (0, C2p - C2)))
    w2 = jnp.pad(params["w2"].astype(cdt), ((0, C2p - C2), (0, C1p - C1)))
    b1 = jnp.pad(params["b1"].astype(jnp.float32), (0, C2p - C2)).reshape(1, C2p)
    b2 = jnp.pad(params["b2"].astype(jnp.float32), (0, C1p - C1)).reshape(1, C1p)

    # ---- tokens: flatten (B, N) into one parallel axis, cast to compute dtype,
    #      lane-pad the input channels (no masked partial-lane loads).
    x2 = x.reshape(T, C1).astype(cdt)
    if C1p != C1:
        x2 = jnp.pad(x2, ((0, 0), (0, C1p - C1)))

    x_bytes = _itemsize(cdt)
    out_bytes = _itemsize(out_dtype)
    cdt_bytes = _itemsize(cdt)
    w_buffers = 1 if _SINGLE_BUFFER_WEIGHTS else 2
    budget = _vmem_budget_bytes()
    min_rows = 16 if min(x_bytes, out_bytes) < 4 else 8

    if tn is None:
        tn = _pick_tn(T, C1p, C2p, x_bytes, out_bytes, cdt_bytes,
                      w_buffers, budget, min_rows)
    assert T % tn == 0, f"tile {tn} must divide B*N={T}"
    assert tn % min_rows == 0 or tn == T, \
        f"tile {tn} must be a multiple of {min_rows} (or the full token count)"

    need = _footprint_bytes(tn, C1p, C2p, x_bytes, out_bytes, cdt_bytes, w_buffers)
    vmem_limit = int(max(min(need, budget), 16 << 20))

    def const_spec(shape):
        if _SINGLE_BUFFER_WEIGHTS:
            return pl.BlockSpec(shape, lambda i: (0, 0),
                                pipeline_mode=pl.Buffered(1))
        return pl.BlockSpec(shape, lambda i: (0, 0))

    in_specs = [
        pl.BlockSpec((tn, C1p), lambda i: (i, 0)),  # x token tile (streamed)
        const_spec((C1p, C2p)),                     # w1 (resident)
        const_spec((1, C2p)),                       # b1
        const_spec((C2p, C1p)),                     # w2 (resident)
        const_spec((1, C1p)),                       # b2
    ]
    out_spec = pl.BlockSpec((tn, C1p), lambda i: (i, 0))

    cost = pl.CostEstimate(
        flops=2 * T * (C1p * C2p + C2p * C1p),
        transcendentals=T * C2p,
        bytes_accessed=(T * C1p * (x_bytes + out_bytes)
                        + 2 * C1p * C2p * cdt_bytes + (C1p + C2p) * 4),
    )

    out2 = pl.pallas_call(
        mlp_ffn_kernel,
        out_shape=jax.ShapeDtypeStruct((T, C1p), out_dtype),
        grid_spec=pltpu.PrefetchScalarGridSpec(
            num_scalar_prefetch=0,
            grid=(T // tn,),
            in_specs=in_specs,
            out_specs=out_spec,
        ),
        compiler_params=pltpu.CompilerParams(
            dimension_semantics=("parallel",),
            vmem_limit_bytes=vmem_limit,
        ),
        cost_estimate=cost,
    )(x2, w1, b1, w2, b2)

    out = out2.reshape(B, N, C1p)
    if keep_padded or C1p == C1:
        return out
    # TODO(synk): downstream consumers can pass keep_padded=True and fuse this
    # channel slice into their own op to avoid the extra HBM pass.
    return out[..., :C1]


def ref_forward(x, params):
    """Pure-JAX reference mirroring the PyTorch forward exactly."""
    h = x @ params["w1"] + params["b1"]
    a = jax.nn.gelu(h, approximate=False)
    return a @ params["w2"] + params["b2"]


if __name__ == "__main__":
    B, N = 2, 256          # batch, tokens
    C1, C2 = 32, 64        # in/out channels, hidden channels

    key = jax.random.PRNGKey(0)
    ks = jax.random.split(key, 5)
    params = {
        "w1": 0.1 * jax.random.normal(ks[0], (C1, C2), jnp.float32),
        "b1": 0.1 * jax.random.normal(ks[1], (C2,), jnp.float32),
        "w2": 0.1 * jax.random.normal(ks[2], (C2, C1), jnp.float32),
        "b2": 0.1 * jax.random.normal(ks[3], (C1,), jnp.float32),
    }
    x = jax.random.normal(ks[4], (B, N, C1), jnp.float32)
    ref = ref_forward(x, params)

    # Exact-precision path (f32 MXU operands): tight tolerance.
    out_f32 = jax.block_until_ready(
        mlp_ffn_forward(x, params, compute_dtype=jnp.float32))
    np.testing.assert_allclose(np.asarray(out_f32), np.asarray(ref),
                               rtol=1e-4, atol=1e-4)

    # Default fast path (bf16 MXU operands, f32 accumulation): looser tolerance.
    out_bf16 = jax.block_until_ready(mlp_ffn_forward(x, params))
    np.testing.assert_allclose(np.asarray(out_bf16), np.asarray(ref),
                               rtol=2e-2, atol=2e-2)

    print("KERNEL_OK")
</pallas_src>

<mosaic_0001>
module attributes {stable_mosaic.version = 11 : i64} {
  func.func @mlp_ffn_kernel(%arg0: i32, %arg1: memref<512x128xf32, #tpu.memory_space<vmem>>, %arg2: memref<128x128xf32, #tpu.memory_space<vmem>>, %arg3: memref<1x128xf32, #tpu.memory_space<vmem>>, %arg4: memref<128x128xf32, #tpu.memory_space<vmem>>, %arg5: memref<1x128xf32, #tpu.memory_space<vmem>>, %arg6: memref<512x128xf32, #tpu.memory_space<vmem>>) attributes {dimension_semantics = [#tpu.dimension_semantics<parallel>], iteration_bounds = array<i64: 1>, scalar_prefetch = 0 : i64, scratch_operands = 0 : i64, tpu.core_type = #tpu.core_type<tc>, window_params = [{transform_indices = @transform_0, window_bounds = array<i64: 512, 128>}, {pipeline_mode = #tpu.pipeline_mode<synchronous>, transform_indices = @transform_1, window_bounds = array<i64: 128, 128>}, {pipeline_mode = #tpu.pipeline_mode<synchronous>, transform_indices = @transform_2, window_bounds = array<i64: 1, 128>}, {pipeline_mode = #tpu.pipeline_mode<synchronous>, transform_indices = @transform_3, window_bounds = array<i64: 128, 128>}, {pipeline_mode = #tpu.pipeline_mode<synchronous>, transform_indices = @transform_4, window_bounds = array<i64: 1, 128>}, {transform_indices = @transform_5, window_bounds = array<i64: 512, 128>}]} {
    %c0 = arith.constant 0 : index
    %c0_0 = arith.constant 0 : index
    %0 = vector.load %arg1[%c0, %c0_0] : memref<512x128xf32, #tpu.memory_space<vmem>>, vector<512x128xf32>
    %c0_1 = arith.constant 0 : index
    %c0_2 = arith.constant 0 : index
    %1 = vector.load %arg2[%c0_1, %c0_2] : memref<128x128xf32, #tpu.memory_space<vmem>>, vector<128x128xf32>
    %cst = arith.constant dense<0.000000e+00> : vector<512x128xf32>
    %2 = tpu.matmul %0, %1, %cst {dimension_numbers = #tpu.dot_dimension_numbers<[1], [0], [0], [1], [0, 0, 1, 1], [], []>} : vector<512x128xf32>, vector<128x128xf32>, vector<512x128xf32> -> vector<512x128xf32>
    %c0_3 = arith.constant 0 : index
    %c0_4 = arith.constant 0 : index
    %3 = vector.load %arg3[%c0_3, %c0_4] : memref<1x128xf32, #tpu.memory_space<vmem>>, vector<1x128xf32>
    %4 = vector.broadcast %3 : vector<1x128xf32> to vector<512x128xf32>
    %5 = arith.addf %2, %4 : vector<512x128xf32>
    %cst_5 = arith.constant 5.000000e-01 : f32
    %6 = vector.broadcast %cst_5 : f32 to vector<512x128xf32>
    %7 = arith.mulf %6, %5 : vector<512x128xf32>
    %cst_6 = arith.constant 0.707106769 : f32
    %8 = vector.broadcast %cst_6 : f32 to vector<512x128xf32>
    %9 = arith.mulf %5, %8 : vector<512x128xf32>
    %10 = math.erf %9 : vector<512x128xf32>
    %cst_7 = arith.constant 1.000000e+00 : f32
    %11 = vector.broadcast %cst_7 : f32 to vector<512x128xf32>
    %12 = arith.addf %11, %10 : vector<512x128xf32>
    %13 = arith.mulf %7, %12 : vector<512x128xf32>
    %c0_8 = arith.constant 0 : index
    %c0_9 = arith.constant 0 : index
    %14 = vector.load %arg4[%c0_8, %c0_9] : memref<128x128xf32, #tpu.memory_space<vmem>>, vector<128x128xf32>
    %cst_10 = arith.constant dense<0.000000e+00> : vector<512x128xf32>
    %15 = tpu.matmul %13, %14, %cst_10 {dimension_numbers = #tpu.dot_dimension_numbers<[1], [0], [0], [1], [0, 0, 1, 1], [], []>} : vector<512x128xf32>, vector<128x128xf32>, vector<512x128xf32> -> vector<512x128xf32>
    %c0_11 = arith.constant 0 : index
    %c0_12 = arith.constant 0 : index
    %16 = vector.load %arg5[%c0_11, %c0_12] : memref<1x128xf32, #tpu.memory_space<vmem>>, vector<1x128xf32>
    %17 = vector.broadcast %16 : vector<1x128xf32> to vector<512x128xf32>
    %18 = arith.addf %15, %17 : vector<512x128xf32>
    %c0_13 = arith.constant 0 : index
    %c0_14 = arith.constant 0 : index
    %19 = vector.load %arg6[%c0_13, %c0_14] : memref<512x128xf32, #tpu.memory_space<vmem>>, vector<512x128xf32>
    tpu.vector_store %arg6[%c0_13, %c0_14], %18 {strides = array<i32>} : memref<512x128xf32, #tpu.memory_space<vmem>>, vector<512x128xf32>,
    return
  }
  func.func @transform_0(%arg0: i32) -> (i32, i32) {
    %c0_i32 = arith.constant 0 : i32
    %c0_i32_0 = arith.constant 0 : i32
    return %arg0, %c0_i32 : i32, i32
  }
  func.func @transform_1(%arg0: i32) -> (i32, i32) {
    %c0_i32 = arith.constant 0 : i32
    %c0_i32_0 = arith.constant 0 : i32
    %c0_i32_1 = arith.constant 0 : i32
    return %c0_i32, %c0_i32_0 : i32, i32
  }
  func.func @transform_2(%arg0: i32) -> (i32, i32) {
    %c0_i32 = arith.constant 0 : i32
    %c0_i32_0 = arith.constant 0 : i32
    %c0_i32_1 = arith.constant 0 : i32
    return %c0_i32, %c0_i32_0 : i32, i32
  }
  func.func @transform_3(%arg0: i32) -> (i32, i32) {
    %c0_i32 = arith.constant 0 : i32
    %c0_i32_0 = arith.constant 0 : i32
    %c0_i32_1 = arith.constant 0 : i32
    return %c0_i32, %c0_i32_0 : i32, i32
  }
  func.func @transform_4(%arg0: i32) -> (i32, i32) {
    %c0_i32 = arith.constant 0 : i32
    %c0_i32_0 = arith.constant 0 : i32
    %c0_i32_1 = arith.constant 0 : i32
    return %c0_i32, %c0_i32_0 : i32, i32
  }
  func.func @transform_5(%arg0: i32) -> (i32, i32) {
    %c0_i32 = arith.constant 0 : i32
    %c0_i32_0 = arith.constant 0 : i32
    return %arg0, %c0_i32 : i32, i32
  }
}

</mosaic_0001>

<bundles_post_ra>
// kernel: tpu_custom_call.1
= control target key start
LH: loop header
LB: loop body
LE: loop exit
PB: predicated region body
PF: predicated region fallthrough
CT: control target
= control target key end

     0   :  { %10 = vsyncpa [#allocation3], 0  ;;  %s2505_s0 = inlined_call_operand.hbm [shape: f32[512,128], index: 0, kind: input, shape index: {}]   ;;  %s2506_s1 = inlined_call_operand.hbm [shape: f32[128,128], index: 1, kind: input, shape index: {}]   ;;  %s2507_s2 = inlined_call_operand.vmem [shape: f32[1,128], index: 2, kind: input, shape index: {}]   ;;  %s2508_s3 = inlined_call_operand.hbm [shape: f32[128,128], index: 3, kind: input, shape index: {}]   ;;  %s2509_s4 = inlined_call_operand.vmem [shape: f32[1,128], index: 4, kind: input, shape index: {}]   ;;  %s2510_s5 = inlined_call_operand.hbm [shape: f32[512,128], index: 5, kind: output, shape index: {}]  }
   0x1   :  { %11 = vsyncpa [#allocation6], 0 }
   0x2   :  { %12 = vsyncpa [#allocation4], 0  ;;  %s2055_s18 = smov [#allocation5]   ;;  %s2056_s20 = smov [#allocation2]  }
   0x3   :  { %s30_s19 = sshll.u32 %s2055_s18, 4  ;;  %s18_s21 = sshll.u32 %s2056_s20, 4  ;;  %s31_s19 = int_to_ptr.vmem [resolvable:$true] %s30_s19  ;;  %s2091_s21 = int_to_ptr.vmem [resolvable:$true] %s18_s21 }
   0x4   :  { %s1961_s24 = scalar_lea.hbm %s2506_s1, 2048 }
   0x5   :  { %p1962_p0 = scmp.ne.s32.totalorder %s2506_s1, %s1961_s24  ;;  %p1965_p1 = scmp.lt.u32.totalorder %s1961_s24, %s2506_s1 }
   0x7   :  { %p1967_p2 = pnand %p1965_p1, %p1962_p0 }
   0x9   :  { %1970 = shalt.err (!%p1967_p2)
}
   0xa   :  { %s1971_s29 = scalar_lea.vmem %s31_s19, 2048  ;;  %p1976_p4 = scmp.lt.s32.totalorder %s31_s19, %s31_s19 }
   0xb   :  { %p1972_p3 = scmp.ne.s32.totalorder %s31_s19, %s1971_s29  ;;  %p1977_p5 = scmp.lt.s32.totalorder %s1971_s29, %s1971_s29 }
   0xd   :  { %p1978_p6 = por %p1977_p5, %p1976_p4 }
   0xf   :  { %p1979_p7 = pnand %p1978_p6, %p1972_p3 }
  0x11   :  { %1982 = shalt.err (!%p1979_p7)
}
  0x12   :  { %s2057_s30 = smov 128   ;;  %s2058_s6 = smov 8  }
  0x13   :  { %36 = dma.hbm_to_vmem [thread:$0]  %s2506_s1, 2048, %s31_s19, [#allocation6], %s2057_s30, %s2057_s30, %s2058_s6  }
  0x14   :  { %s1983_s11 = scalar_lea.hbm %s2505_s0, 8192 }
  0x15   :  { %p1984_p8 = scmp.ne.s32.totalorder %s2505_s0, %s1983_s11  ;;  %p1987_p9 = scmp.lt.u32.totalorder %s1983_s11, %s2505_s0 }
  0x17   :  { %p1989_p10 = pnand %p1987_p9, %p1984_p8 }
  0x19   :  { %1992 = shalt.err (!%p1989_p10)
}
  0x1a   :  { %s1993_s16 = scalar_lea.vmem %s2091_s21, 8192  ;;  %p1998_p12 = scmp.lt.s32.totalorder %s2091_s21, %s2091_s21 }
  0x1b   :  { %p1994_p11 = scmp.ne.s32.totalorder %s2091_s21, %s1993_s16  ;;  %p1999_p13 = scmp.lt.s32.totalorder %s1993_s16, %s1993_s16 }
  0x1d   :  { %p2000_p0 = por %p1999_p13, %p1998_p12 }
  0x1f   :  { %p2001_p1 = pnand %p2000_p0, %p1994_p11 }
  0x21   :  { %2004 = shalt.err (!%p2001_p1)
}
  0x22   :  { %24 = dma.hbm_to_vmem [thread:$0]  %s2505_s0, 8192, %s2091_s21, [#allocation3], %s2057_s30, %s2057_s30, %s2058_s6  }
  0x23   :  { %s2059_s18 = smov [#allocation7]   ;;  %s2005_s23 = scalar_lea.hbm %s2508_s3, 2048 }
  0x24   :  { %s44_s19 = sshll.u32 %s2059_s18, 4  ;;  %p2006_p2 = scmp.ne.s32.totalorder %s2508_s3, %s2005_s23  ;;  %s45_s19 = int_to_ptr.vmem [resolvable:$true] %s44_s19 }
  0x25   :  { %p2009_p3 = scmp.lt.u32.totalorder %s2005_s23, %s2508_s3 }
  0x27   :  { %p2011_p4 = pnand %p2009_p3, %p2006_p2 }
  0x29   :  { %2014 = shalt.err (!%p2011_p4)
}
  0x2a   :  { %s2015_s28 = scalar_lea.vmem %s45_s19, 2048  ;;  %p2020_p6 = scmp.lt.s32.totalorder %s45_s19, %s45_s19 }
  0x2b   :  { %p2016_p5 = scmp.ne.s32.totalorder %s45_s19, %s2015_s28  ;;  %p2021_p7 = scmp.lt.s32.totalorder %s2015_s28, %s2015_s28 }
  0x2d   :  { %p2022_p8 = por %p2021_p7, %p2020_p6 }
  0x2f   :  { %p2023_p9 = pnand %p2022_p8, %p2016_p5 }
  0x31   :  { %2026 = shalt.err (!%p2023_p9)
}
  0x32   :  { %50 = dma.hbm_to_vmem [thread:$0]  %s2508_s3, 2048, %s45_s19, [#allocation6], %s2057_s30, %s2057_s30, %s2058_s6  }
  0x33   :  { %2049 = dma.done.wait [#allocation3], 8192  }
  0x34   :  { %2050 = vsyncadd [#allocation3], 4294959104 }
  0x35   :  { %2051 = dma.done.wait [#allocation6], 4096  }
  0x36   :  { %2052 = vsyncadd [#allocation6], 4294963200  ;;  %v126_v0 = vld [vmem:[#allocation5] sm:$0xff]  ;;  %v127_v1 = vld [vmem:[#allocation5 + $0x8] sm:$0xff] }
  0x37   :  { %v128_v2 = vld [vmem:[#allocation5 + $0x10] sm:$0xff]  ;;  %v1762_v3 = vpack.c.bf16 %v127_v1, %v126_v0  ;;  %v129_v4 = vld [vmem:[#allocation5 + $0x18] sm:$0xff]  ;;  %v130_v6 = vld [vmem:[#allocation5 + $0x20] sm:$0xff] }
  0x38   :  { %v1766_v5 = vpack.c.bf16 %v129_v4, %v128_v2  ;;  %v131_v7 = vld [vmem:[#allocation5 + $0x28] sm:$0xff]  ;;  %v62_v9 = vld [vmem:[#allocation2] sm:$0xff]  ;;  %v132_v10 = vld [vmem:[#allocation5 + $0x30] sm:$0xff] }
  0x39   :  { %1763 = vmatprep.subr.bf16.mxu0 %v1762_v3  ;;  %v1770_v8 = vpack.c.bf16 %v131_v7, %v130_v6  ;;  %v133_v11 = vld [vmem:[#allocation5 + $0x38] sm:$0xff]  ;;  %1538 = vmatprep.mubr.f32.mxu0 %v62_v9  ;;  %v134_v13 = vld [vmem:[#allocation5 + $0x40] sm:$0xff]  ;;  %v135_v14 = vld [vmem:[#allocation5 + $0x48] sm:$0xff] }
  0x3a   :  { %1765 = vmatpush3.bf16.msra.mxu0 %v1762_v3  ;;  %v1774_v12 = vpack.c.bf16 %v133_v11, %v132_v10  ;;  %v1778_v15 = vpack.c.bf16 %v135_v14, %v134_v13  ;;  %v136_v16 = vld [vmem:[#allocation5 + $0x50] sm:$0xff]  ;;  %v137_v17 = vld [vmem:[#allocation5 + $0x58] sm:$0xff]  ;;  %v138_v19 = vld [vmem:[#allocation5 + $0x60] sm:$0xff] }
  0x3b   :  { %1767 = vmatprep.subr.bf16.mxu0 %v1766_v5  ;;  %v1782_v18 = vpack.c.bf16 %v137_v17, %v136_v16  ;;  %v139_v20 = vld [vmem:[#allocation5 + $0x68] sm:$0xff]  ;;  %v140_v22 = vld [vmem:[#allocation5 + $0x70] sm:$0xff]  ;;  %v141_v23 = vld [vmem:[#allocation5 + $0x78] sm:$0xff] }
  0x3c   :  { %v1786_v21 = vpack.c.bf16 %v139_v20, %v138_v19  ;;  %v1790_v24 = vpack.c.bf16 %v141_v23, %v140_v22  ;;  %v854_v25 = vld [vmem:[#allocation7] sm:$0xff]  ;;  %v855_v26 = vld [vmem:[#allocation7 + $0x8] sm:$0xff]  ;;  %v856_v27 = vld [vmem:[#allocation7 + $0x10] sm:$0xff] }
  0x3d   :  { %v63_v28 = vld [vmem:[#allocation2 + $0x8] sm:$0xff]  ;;  %v1794_v29 = vpack.c.bf16 %v855_v26, %v854_v25  ;;  %v857_v30 = vld [vmem:[#allocation7 + $0x18] sm:$0xff]  ;;  %v64_v31 = vld [vmem:[#allocation2 + $0x10] sm:$0xff] }
  0x3e   :  { %1769 = vmatpush3.bf16.msra.mxu0 %v1766_v5  ;;  %v1798_v32 = vpack.c.bf16 %v857_v30, %v856_v27  ;;  %v858_v33 = vld [vmem:[#allocation7 + $0x20] sm:$0xff]  ;;  %v859_v34 = vld [vmem:[#allocation7 + $0x28] sm:$0xff]  ;;  %v65_v35 = vld [vmem:[#allocation2 + $0x18] sm:$0xff] }
  0x3f   :  { %1771 = vmatprep.subr.bf16.mxu0 %v1770_v8  ;;  %1795 = vmatprep.subr.bf16.mxu1 %v1794_v29  ;;  %v1802_v36 = vpack.c.bf16 %v859_v34, %v858_v33  ;;  %v66_v37 = vld [vmem:[#allocation2 + $0x20] sm:$0xff]  ;;  %v67_v38 = vld [vmem:[#allocation2 + $0x28] sm:$0xff]  ;;  %v68_v39 = vld [vmem:[#allocation2 + $0x30] sm:$0xff] }
  0x40   :  { %1797 = vmatpush3.bf16.msra.mxu1 %v1794_v29  ;;  %v69_v40 = vld [vmem:[#allocation2 + $0x38] sm:$0xff]  ;;  %v70_v41 = vld [vmem:[#allocation2 + $0x40] sm:$0xff]  ;;  %v71_v42 = vld [vmem:[#allocation2 + $0x48] sm:$0xff] }
  0x41   :  { %1799 = vmatprep.subr.bf16.mxu1 %v1798_v32  ;;  %v72_v43 = vld [vmem:[#allocation2 + $0x50] sm:$0xff]  ;;  %v73_v44 = vld [vmem:[#allocation2 + $0x58] sm:$0xff]  ;;  %v74_v45 = vld [vmem:[#allocation2 + $0x60] sm:$0xff] }
  0x42   :  { %1773 = vmatpush3.bf16.msra.mxu0 %v1770_v8  ;;  %v75_v46 = vld [vmem:[#allocation2 + $0x68] sm:$0xff]  ;;  %v76_v47 = vld [vmem:[#allocation2 + $0x70] sm:$0xff]  ;;  %v77_v48 = vld [vmem:[#allocation2 + $0x78] sm:$0xff] }
  0x43   :  { %1775 = vmatprep.subr.bf16.mxu0 %v1774_v12  ;;  %v78_v49 = vld [vmem:[#allocation2 + $0x80] sm:$0xff]  ;;  %v79_v50 = vld [vmem:[#allocation2 + $0x88] sm:$0xff]  ;;  %v80_v51 = vld [vmem:[#allocation2 + $0x90] sm:$0xff] }
  0x44   :  { %1801 = vmatpush3.bf16.msra.mxu1 %v1798_v32  ;;  %v81_v52 = vld [vmem:[#allocation2 + $0x98] sm:$0xff]  ;;  %v82_v53 = vld [vmem:[#allocation2 + $0xa0] sm:$0xff]  ;;  %v83_v54 = vld [vmem:[#allocation2 + $0xa8] sm:$0xff] }
  0x45   :  { %1803 = vmatprep.subr.bf16.mxu1 %v1802_v36  ;;  %v84_v55 = vld [vmem:[#allocation2 + $0xb0] sm:$0xff]  ;;  %v85_v56 = vld [vmem:[#allocation2 + $0xb8] sm:$0xff]  ;;  %v86_v57 = vld [vmem:[#allocation2 + $0xc0] sm:$0xff] }
  0x46   :  { %1777 = vmatpush3.bf16.msra.mxu0 %v1774_v12  ;;  %v87_v58 = vld [vmem:[#allocation2 + $0xc8] sm:$0xff]  ;;  %v88_v59 = vld [vmem:[#allocation2 + $0xd0] sm:$0xff]  ;;  %v89_v60 = vld [vmem:[#allocation2 + $0xd8] sm:$0xff] }
  0x47   :  { %1779 = vmatprep.subr.bf16.mxu0 %v1778_v15  ;;  %v90_v61 = vld [vmem:[#allocation2 + $0xe0] sm:$0xff]  ;;  %v91_v62 = vld [vmem:[#allocation2 + $0xe8] sm:$0xff]  ;;  %v92_v63 = vld [vmem:[#allocation2 + $0xf0] sm:$0xff] }
  0x48   :  { %1805 = vmatpush3.bf16.msra.mxu1 %v1802_v36  ;;  %v93_v0 = vld [vmem:[#allocation2 + $0xf8] sm:$0xff]  ;;  %v94_v1 = vld [vmem:[#allocation2 + $0x100] sm:$0xff]  ;;  %v95_v2 = vld [vmem:[#allocation2 + $0x108] sm:$0xff] }
  0x49   :  { %v96_v3 = vld [vmem:[#allocation2 + $0x110] sm:$0xff]  ;;  %v97_v4 = vld [vmem:[#allocation2 + $0x118] sm:$0xff]  ;;  %v98_v5 = vld [vmem:[#allocation2 + $0x120] sm:$0xff] }
  0x4a   :  { %1781 = vmatpush3.bf16.msra.mxu0 %v1778_v15  ;;  %v99_v6 = vld [vmem:[#allocation2 + $0x128] sm:$0xff]  ;;  %v100_v7 = vld [vmem:[#allocation2 + $0x130] sm:$0xff]  ;;  %v101_v8 = vld [vmem:[#allocation2 + $0x138] sm:$0xff] }
  0x4b   :  { %1783 = vmatprep.subr.bf16.mxu0 %v1782_v18  ;;  %v102_v9 = vld [vmem:[#allocation2 + $0x140] sm:$0xff]  ;;  %v103_v10 = vld [vmem:[#allocation2 + $0x148] sm:$0xff]  ;;  %v104_v11 = vld [vmem:[#allocation2 + $0x150] sm:$0xff] }
  0x4c   :  { %v105_v12 = vld [vmem:[#allocation2 + $0x158] sm:$0xff]  ;;  %v106_v13 = vld [vmem:[#allocation2 + $0x160] sm:$0xff]  ;;  %v860_v14 = vld [vmem:[#allocation7 + $0x30] sm:$0xff] }
  0x4d   :  { %v861_v15 = vld [vmem:[#allocation7 + $0x38] sm:$0xff]  ;;  %v107_v17 = vld [vmem:[#allocation2 + $0x168] sm:$0xff]  ;;  %v862_v19 = vld [vmem:[#allocation7 + $0x40] sm:$0xff] }
  0x4e   :  { %1785 = vmatpush3.bf16.msra.mxu0 %v1782_v18  ;;  %v1806_v16 = vpack.c.bf16 %v861_v15, %v860_v14  ;;  %v108_v18 = vld [vmem:[#allocation2 + $0x170] sm:$0xff]  ;;  %v863_v20 = vld [vmem:[#allocation7 + $0x48] sm:$0xff]  ;;  %v109_v22 = vld [vmem:[#allocation2 + $0x178] sm:$0xff] }
  0x4f   :  { %1787 = vmatprep.subr.bf16.mxu0 %v1786_v21  ;;  %v110_v23 = vld [vmem:[#allocation2 + $0x180] sm:$0xff]  ;;  %v865_v25 = vld [vmem:[#allocation7 + $0x58] sm:$0xff]  ;;  %v111_v27 = vld [vmem:[#allocation2 + $0x188] sm:$0xff] }
  0x50   :  { %1807 = vmatprep.subr.bf16.mxu1 %v1806_v16  ;;  %v866_v29 = vld [vmem:[#allocation7 + $0x60] sm:$0xff]  ;;  %v867_v30 = vld [vmem:[#allocation7 + $0x68] sm:$0xff]  ;;  %v113_v32 = vld [vmem:[#allocation2 + $0x198] sm:$0xff] }
  0x51   :  { %1809 = vmatpush3.bf16.msra.mxu1 %v1806_v16  ;;  %v114_v33 = vld [vmem:[#allocation2 + $0x1a0] sm:$0xff]  ;;  %v868_v34 = vld [vmem:[#allocation7 + $0x70] sm:$0xff] }
  0x52   :  { %1789 = vmatpush3.bf16.msra.mxu0 %v1786_v21  ;;  %v1810_v21 = vpack.c.bf16 %v863_v20, %v862_v19 }
  0x53   :  { %1791 = vmatprep.subr.bf16.mxu0 %v1790_v24 }
  0x54   :  { %1811 = vmatprep.subr.bf16.mxu1 %v1810_v21 }
  0x55   :  { %1813 = vmatpush3.bf16.msra.mxu1 %v1810_v21 }
  0x56   :  { %1793 = vmatpush3.bf16.msra.mxu0 %v1790_v24  ;;  %v864_v24 = vld [vmem:[#allocation7 + $0x50] sm:$0xff] }
  0x57   :  { %v1814_v26 = vpack.c.bf16 %v865_v25, %v864_v24 }
  0x59   :  { %1539 = vmatmul.mubr.f32.vlgmr.msra.gmra.mrb[0].mxu0 %v63_v28  ;;  %1815 = vmatprep.subr.bf16.mxu1 %v1814_v26  ;;  %v112_v28 = vld [vmem:[#allocation2 + $0x190] sm:$0xff] }
  0x5a   :  { %1541 = vmatprep.mubr.f32.mxu0 %v64_v31  ;;  %1817 = vmatpush3.bf16.msra.mxu1 %v1814_v26  ;;  %v1818_v31 = vpack.c.bf16 %v867_v30, %v866_v29 }
  0x5c   :  { %1819 = vmatprep.subr.bf16.mxu1 %v1818_v31 }
  0x5d   :  { %1542 = vmatmul.mubr.f32.gmra.mrb[2].mxu0 %v65_v35  ;;  %v869_v35 = vld [vmem:[#allocation7 + $0x78] sm:$0xff] }
  0x5e   :  { %1544 = vmatprep.mubr.f32.mxu0 %v66_v37  ;;  %1821 = vmatpush3.bf16.msra.mxu1 %v1818_v31  ;;  %v1822_v36 = vpack.c.bf16 %v869_v35, %v868_v34  ;;  %v115_v37 = vld [vmem:[#allocation2 + $0x1a8] sm:$0xff] }
  0x60   :  { %1823 = vmatprep.subr.bf16.mxu1 %v1822_v36 }
  0x61   :  { %1545 = vmatmul.mubr.f32.gmra.mrb[4].mxu0 %v67_v38  ;;  %v116_v38 = vld [vmem:[#allocation2 + $0x1b0] sm:$0xff] }
  0x62   :  { %1547 = vmatprep.mubr.f32.mxu0 %v68_v39  ;;  %1825 = vmatpush3.bf16.msra.mxu1 %v1822_v36  ;;  %v117_v39 = vld [vmem:[#allocation2 + $0x1b8] sm:$0xff] }
  0x65   :  { %1548 = vmatmul.mubr.f32.gmra.mrb[6].mxu0 %v69_v40  ;;  %v118_v40 = vld [vmem:[#allocation2 + $0x1c0] sm:$0xff] }
  0x66   :  { %1550 = vmatprep.mubr.f32.mxu0 %v70_v41  ;;  %v119_v41 = vld [vmem:[#allocation2 + $0x1c8] sm:$0xff] }
  0x69   :  { %1551 = vmatmul.mubr.f32.gmra.mrb[8].mxu0 %v71_v42  ;;  %v120_v42 = vld [vmem:[#allocation2 + $0x1d0] sm:$0xff] }
  0x6a   :  { %1553 = vmatprep.mubr.f32.mxu0 %v72_v43  ;;  %v121_v43 = vld [vmem:[#allocation2 + $0x1d8] sm:$0xff] }
  0x6d   :  { %1554 = vmatmul.mubr.f32.gmra.mrb[10].mxu0 %v73_v44  ;;  %v122_v44 = vld [vmem:[#allocation2 + $0x1e0] sm:$0xff] }
  0x6e   :  { %1556 = vmatprep.mubr.f32.mxu0 %v74_v45  ;;  %v123_v45 = vld [vmem:[#allocation2 + $0x1e8] sm:$0xff] }
  0x71   :  { %1557 = vmatmul.mubr.f32.gmra.mrb[12].mxu0 %v75_v46  ;;  %v124_v46 = vld [vmem:[#allocation2 + $0x1f0] sm:$0xff] }
  0x72   :  { %1559 = vmatprep.mubr.f32.mxu0 %v76_v47  ;;  %v125_v47 = vld [vmem:[#allocation2 + $0x1f8] sm:$0xff] }
  0x75   :  { %1560 = vmatmul.mubr.f32.gmra.mrb[14].mxu0 %v77_v48  ;;  %v2146_v48 = vld [vmem:[%s2507_s2] ss:$0 sm:$0xff] }
  0x76   :  { %1562 = vmatprep.mubr.f32.mxu0 %v78_v49 }
  0x79   :  { %1563 = vmatmul.mubr.f32.gmra.mrb[16].mxu0 %v79_v50 }
  0x7a   :  { %1565 = vmatprep.mubr.f32.mxu0 %v80_v51 }
  0x7d   :  { %1566 = vmatmul.mubr.f32.gmra.mrb[18].mxu0 %v81_v52 }
  0x7e   :  { %1568 = vmatprep.mubr.f32.mxu0 %v82_v53 }
  0x81   :  { %1569 = vmatmul.mubr.f32.gmra.mrb[20].mxu0 %v83_v54 }
  0x82   :  { %1571 = vmatprep.mubr.f32.mxu0 %v84_v55 }
  0x85   :  { %1572 = vmatmul.mubr.f32.gmra.mrb[22].mxu0 %v85_v56 }
  0x86   :  { %1574 = vmatprep.mubr.f32.mxu0 %v86_v57 }
  0x89   :  { %1575 = vmatmul.mubr.f32.gmra.mrb[24].mxu0 %v87_v58 }
  0x8a   :  { %1577 = vmatprep.mubr.f32.mxu0 %v88_v59 }
  0x8d   :  { %1578 = vmatmul.mubr.f32.gmra.mrb[26].mxu0 %v89_v60 }
  0x8e   :  { %1580 = vmatprep.mubr.f32.mxu0 %v90_v61 }
  0x91   :  { %1581 = vmatmul.mubr.f32.gmra.mrb[28].mxu0 %v91_v62 }
  0x92   :  { %1583 = vmatprep.mubr.f32.mxu0 %v92_v63 }
  0x95   :  { %1584 = vmatmul.mubr.f32.gmra.mrb[30].mxu0 %v93_v0 }
  0x96   :  { %1586 = vmatprep.mubr.f32.mxu0 %v94_v1 }
  0x99   :  { %1587 = vmatmul.mubr.f32.gmra.mrb[32].mxu0 %v95_v2 }
  0x9a   :  { %1589 = vmatprep.mubr.f32.mxu0 %v96_v3 }
  0x9d   :  { %1590 = vmatmul.mubr.f32.gmra.mrb[34].mxu0 %v97_v4 }
  0x9e   :  { %1592 = vmatprep.mubr.f32.mxu0 %v98_v5 }
  0xa1   :  { %1593 = vmatmul.mubr.f32.gmra.mrb[36].mxu0 %v99_v6 }
  0xa2   :  { %1595 = vmatprep.mubr.f32.mxu0 %v100_v7 }
  0xa5   :  { %1596 = vmatmul.mubr.f32.gmra.mrb[38].mxu0 %v101_v8 }
  0xa6   :  { %1598 = vmatprep.mubr.f32.mxu0 %v102_v9 }
  0xa9   :  { %1599 = vmatmul.mubr.f32.gmra.mrb[40].mxu0 %v103_v10 }
  0xaa   :  { %1601 = vmatprep.mubr.f32.mxu0 %v104_v11 }
  0xad   :  { %1602 = vmatmul.mubr.f32.gmra.mrb[42].mxu0 %v105_v12 }
  0xae   :  { %1604 = vmatprep.mubr.f32.mxu0 %v106_v13 }
  0xb1   :  { %1605 = vmatmul.mubr.f32.gmra.mrb[44].mxu0 %v107_v17 }
  0xb2   :  { %1607 = vmatprep.mubr.f32.mxu0 %v108_v18 }
  0xb5   :  { %1608 = vmatmul.mubr.f32.gmra.mrb[46].mxu0 %v109_v22 }
  0xb6   :  { %1610 = vmatprep.mubr.f32.mxu0 %v110_v23 }
  0xb9   :  { %1611 = vmatmul.mubr.f32.gmra.mrb[48].mxu0 %v111_v27 }
  0xba   :  { %1613 = vmatprep.mubr.f32.mxu0 %v112_v28 }
  0xbd   :  { %1614 = vmatmul.mubr.f32.gmra.mrb[50].mxu0 %v113_v32 }
  0xbe   :  { %1616 = vmatprep.mubr.f32.mxu0 %v114_v33 }
  0xc1   :  { %1617 = vmatmul.mubr.f32.gmra.mrb[52].mxu0 %v115_v37 }
  0xc2   :  { %1619 = vmatprep.mubr.f32.mxu0 %v116_v38 }
  0xc5   :  { %1620 = vmatmul.mubr.f32.gmra.mrb[54].mxu0 %v117_v39 }
  0xc6   :  { %1622 = vmatprep.mubr.f32.mxu0 %v118_v40 }
  0xc9   :  { %1623 = vmatmul.mubr.f32.gmra.mrb[56].mxu0 %v119_v41 }
  0xca   :  { %1625 = vmatprep.mubr.f32.mxu0 %v120_v42 }
  0xcd   :  { %1626 = vmatmul.mubr.f32.gmra.mrb[58].mxu0 %v121_v43 }
  0xce   :  { %1628 = vmatprep.mubr.f32.mxu0 %v122_v44 }
  0xd1   :  { %1629 = vmatmul.mubr.f32.gmra.mrb[60].mxu0 %v123_v45 }
  0xd2   :  { %1631 = vmatprep.mubr.f32.mxu0 %v124_v46 }
  0xd5   :  { %1632 = vmatmul.mubr.f32.gmra.mrb[62].mxu0 %v125_v47 }
 0x12c   :  { %v1540_v49 = vpop.f32.mrb[0].mxu0 }
 0x12d   :  { %v221_v50 = vadd.f32 %v1540_v49, %v2146_v48  ;;  %v215_v51 = vpop.f32.mrb[1].mxu0 }
 0x12e   :  { %v216_v52 = vadd.f32 %v2146_v48, %v215_v51 }
 0x12f   :  { %v599_v53 = vmul.f32 0.70710677, %v221_v50  ;;  %v535_v17 = vmul.f32 0.5, %v221_v50 }
 0x130   :  { %v598_v54 = vmul.f32 0.70710677, %v216_v52  ;;  %v1543_v55 = vpop.f32.mrb[2].mxu0  ;;  %v534_v15 = vmul.f32 0.5, %v216_v52 }
 0x131   :  { %1832 = verf.f32 %v599_v53  ;;  %v231_v56 = vadd.f32 %v1543_v55, %v2146_v48  ;;  %v225_v57 = vpop.f32.mrb[3].mxu0 }
 0x132   :  { %1834 = verf.f32 %v598_v54  ;;  %v226_v58 = vadd.f32 %v2146_v48, %v225_v57 }
 0x133   :  { %v601_v59 = vmul.f32 0.70710677, %v231_v56  ;;  %v537_v31 = vmul.f32 0.5, %v231_v56 }
 0x134   :  { %v600_v60 = vmul.f32 0.70710677, %v226_v58  ;;  %v1546_v61 = vpop.f32.mrb[4].mxu0  ;;  %v536_v27 = vmul.f32 0.5, %v226_v58 }
 0x135   :  { %1836 = verf.f32 %v601_v59  ;;  %v241_v62 = vadd.f32 %v1546_v61, %v2146_v48  ;;  %v235_v63 = vpop.f32.mrb[5].mxu0 }
 0x136   :  { %1838 = verf.f32 %v600_v60  ;;  %v236_v0 = vadd.f32 %v2146_v48, %v235_v63 }
 0x137   :  { %v603_v1 = vmul.f32 0.70710677, %v241_v62  ;;  %v539_v45 = vmul.f32 0.5, %v241_v62 }
 0x138   :  { %v602_v2 = vmul.f32 0.70710677, %v236_v0  ;;  %v1549_v3 = vpop.f32.mrb[6].mxu0  ;;  %v538_v41 = vmul.f32 0.5, %v236_v0 }
 0x139   :  { %1840 = verf.f32 %v603_v1  ;;  %v2155_v4 = vadd.f32 %v1549_v3, %v2146_v48  ;;  %v245_v5 = vpop.f32.mrb[7].mxu0 }
 0x13a   :  { %1842 = verf.f32 %v602_v2  ;;  %v246_v6 = vadd.f32 %v2146_v48, %v245_v5 }
 0x13b   :  { %v1833_v7 = vpop.eup %1832  ;;  %v605_v8 = vmul.f32 0.70710677, %v2155_v4  ;;  %v541_v60 = vmul.f32 0.5, %v2155_v4 }
 0x13c   :  { %v1835_v9 = vpop.eup %1834  ;;  %v727_v10 = vadd.f32 1.0, %v1833_v7  ;;  %v604_v11 = vmul.f32 0.70710677, %v246_v6  ;;  %v1552_v12 = vpop.f32.mrb[8].mxu0  ;;  %v540_v56 = vmul.f32 0.5, %v246_v6 }
 0x13d   :  { %1844 = verf.f32 %v605_v8  ;;  %v2160_v13 = vadd.f32 %v1552_v12, %v2146_v48  ;;  %v255_v14 = vpop.f32.mrb[9].mxu0  ;;  %v726_v16 = vadd.f32 1.0, %v1835_v9 }
 0x13e   :  { %1846 = verf.f32 %v604_v11  ;;  %v2163_v18 = vadd.f32 %v2146_v48, %v255_v14  ;;  %v791_v26 = vmul.f32 %v727_v10, %v535_v17 }
 0x13f   :  { %v1837_v19 = vpop.eup %1836  ;;  %v607_v20 = vmul.f32 0.70710677, %v2160_v13  ;;  %v790_v21 = vmul.f32 %v726_v16, %v534_v15  ;;  %v543_v10 = vmul.f32 0.5, %v2160_v13 }
 0x140   :  { %v1839_v22 = vpop.eup %1838  ;;  %v729_v23 = vadd.f32 1.0, %v1837_v19  ;;  %v606_v24 = vmul.f32 0.70710677, %v2163_v18  ;;  %v1555_v25 = vpop.f32.mrb[10].mxu0  ;;  %v542_v7 = vmul.f32 0.5, %v2163_v18 }
 0x141   :  { %v728_v28 = vadd.f32 1.0, %v1839_v22  ;;  %1848 = verf.f32 %v607_v20  ;;  %v2168_v29 = vadd.f32 %v1555_v25, %v2146_v48  ;;  %v265_v30 = vpop.f32.mrb[11].mxu0  ;;  %1666 = vmatprep.mubr.f32.mxu1 %v790_v21 }
 0x142   :  { %1850 = verf.f32 %v606_v24  ;;  %v2171_v32 = vadd.f32 %v2146_v48, %v265_v30  ;;  %1667 = vmatmul.mubr.f32.vlgmr.msra.gmra.mrb[0].mxu1 %v791_v26  ;;  %v793_v40 = vmul.f32 %v729_v23, %v537_v31 }
 0x143   :  { %v1841_v33 = vpop.eup %1840  ;;  %v609_v34 = vmul.f32 0.70710677, %v2168_v29  ;;  %v792_v35 = vmul.f32 %v728_v28, %v536_v27  ;;  %v545_v24 = vmul.f32 0.5, %v2168_v29 }
 0x144   :  { %v1843_v36 = vpop.eup %1842  ;;  %v731_v37 = vadd.f32 1.0, %v1841_v33  ;;  %v608_v38 = vmul.f32 0.70710677, %v2171_v32  ;;  %v1558_v39 = vpop.f32.mrb[12].mxu0  ;;  %v544_v21 = vmul.f32 0.5, %v2171_v32 }
 0x145   :  { %v730_v42 = vadd.f32 1.0, %v1843_v36  ;;  %1852 = verf.f32 %v609_v34  ;;  %v2176_v43 = vadd.f32 %v1558_v39, %v2146_v48  ;;  %v275_v44 = vpop.f32.mrb[13].mxu0  ;;  %1669 = vmatprep.mubr.f32.mxu1 %v792_v35 }
 0x146   :  { %1854 = verf.f32 %v608_v38  ;;  %v2179_v46 = vadd.f32 %v2146_v48, %v275_v44  ;;  %1670 = vmatmul.mubr.f32.gmra.mrb[2].mxu1 %v793_v40  ;;  %v795_v55 = vmul.f32 %v731_v37, %v539_v45 }
 0x147   :  { %v1845_v47 = vpop.eup %1844  ;;  %v611_v49 = vmul.f32 0.70710677, %v2176_v43  ;;  %v794_v50 = vmul.f32 %v730_v42, %v538_v41  ;;  %v547_v38 = vmul.f32 0.5, %v2176_v43 }
 0x148   :  { %v1847_v51 = vpop.eup %1846  ;;  %v733_v52 = vadd.f32 1.0, %v1845_v47  ;;  %v610_v53 = vmul.f32 0.70710677, %v2179_v46  ;;  %v1561_v54 = vpop.f32.mrb[14].mxu0  ;;  %v546_v35 = vmul.f32 0.5, %v2179_v46 }
 0x149   :  { %v732_v57 = vadd.f32 1.0, %v1847_v51  ;;  %1856 = verf.f32 %v611_v49  ;;  %v2184_v58 = vadd.f32 %v1561_v54, %v2146_v48  ;;  %v285_v59 = vpop.f32.mrb[15].mxu0  ;;  %1672 = vmatprep.mubr.f32.mxu1 %v794_v50 }
 0x14a   :  { %1858 = verf.f32 %v610_v53  ;;  %v2188_v61 = vadd.f32 %v2146_v48, %v285_v59  ;;  %1673 = vmatmul.mubr.f32.gmra.mrb[4].mxu1 %v795_v55  ;;  %v797_v6 = vmul.f32 %v733_v52, %v541_v60 }
 0x14b   :  { %v1849_v62 = vpop.eup %1848  ;;  %v613_v63 = vmul.f32 0.70710677, %v2184_v58  ;;  %v796_v0 = vmul.f32 %v732_v57, %v540_v56  ;;  %v549_v53 = vmul.f32 0.5, %v2184_v58 }
 0x14c   :  { %v1851_v1 = vpop.eup %1850  ;;  %v735_v2 = vadd.f32 1.0, %v1849_v62  ;;  %v612_v3 = vmul.f32 0.70710677, %v2188_v61  ;;  %v1564_v5 = vpop.f32.mrb[16].mxu0  ;;  %v548_v50 = vmul.f32 0.5, %v2188_v61 }
 0x14d   :  { %v734_v8 = vadd.f32 1.0, %v1851_v1  ;;  %1860 = verf.f32 %v613_v63  ;;  %v2194_v4 = vadd.f32 %v1564_v5, %v2146_v48  ;;  %v295_v9 = vpop.f32.mrb[17].mxu0  ;;  %1675 = vmatprep.mubr.f32.mxu1 %v796_v0 }
 0x14e   :  { %1862 = verf.f32 %v612_v3  ;;  %v2198_v11 = vadd.f32 %v2146_v48, %v295_v9  ;;  %1676 = vmatmul.mubr.f32.gmra.mrb[6].mxu1 %v797_v6  ;;  %v799_v20 = vmul.f32 %v735_v2, %v543_v10 }
 0x14f   :  { %v1853_v12 = vpop.eup %1852  ;;  %v615_v14 = vmul.f32 0.70710677, %v2194_v4  ;;  %v798_v15 = vmul.f32 %v734_v8, %v542_v7  ;;  %v551_v3 = vmul.f32 0.5, %v2194_v4 }
 0x150   :  { %v1855_v16 = vpop.eup %1854  ;;  %v737_v17 = vadd.f32 1.0, %v1853_v12  ;;  %v614_v18 = vmul.f32 0.70710677, %v2198_v11  ;;  %v1567_v19 = vpop.f32.mrb[18].mxu0  ;;  %v550_v0 = vmul.f32 0.5, %v2198_v11 }
 0x151   :  { %v736_v22 = vadd.f32 1.0, %v1855_v16  ;;  %1864 = verf.f32 %v615_v14  ;;  %v2204_v13 = vadd.f32 %v1567_v19, %v2146_v48  ;;  %v305_v23 = vpop.f32.mrb[19].mxu0  ;;  %1678 = vmatprep.mubr.f32.mxu1 %v798_v15 }
 0x152   :  { %1866 = verf.f32 %v614_v18  ;;  %v2208_v25 = vadd.f32 %v2146_v48, %v305_v23  ;;  %1679 = vmatmul.mubr.f32.gmra.mrb[8].mxu1 %v799_v20  ;;  %v801_v34 = vmul.f32 %v737_v17, %v545_v24 }
 0x153   :  { %v1857_v26 = vpop.eup %1856  ;;  %v617_v27 = vmul.f32 0.70710677, %v2204_v13  ;;  %v800_v28 = vmul.f32 %v736_v22, %v544_v21  ;;  %v553_v18 = vmul.f32 0.5, %v2204_v13 }
 0x154   :  { %v1859_v30 = vpop.eup %1858  ;;  %v739_v31 = vadd.f32 1.0, %v1857_v26  ;;  %v616_v32 = vmul.f32 0.70710677, %v2208_v25  ;;  %v1570_v33 = vpop.f32.mrb[20].mxu0  ;;  %v552_v15 = vmul.f32 0.5, %v2208_v25 }
 0x155   :  { %v738_v36 = vadd.f32 1.0, %v1859_v30  ;;  %1868 = verf.f32 %v617_v27  ;;  %v2214_v29 = vadd.f32 %v1570_v33, %v2146_v48  ;;  %v315_v37 = vpop.f32.mrb[21].mxu0  ;;  %1681 = vmatprep.mubr.f32.mxu1 %v800_v28 }
 0x156   :  { %1870 = verf.f32 %v616_v32  ;;  %v2218_v39 = vadd.f32 %v2146_v48, %v315_v37  ;;  %1682 = vmatmul.mubr.f32.gmra.mrb[10].mxu1 %v801_v34  ;;  %v803_v49 = vmul.f32 %v739_v31, %v547_v38 }
 0x157   :  { %v1861_v40 = vpop.eup %1860  ;;  %v619_v41 = vmul.f32 0.70710677, %v2214_v29  ;;  %v802_v42 = vmul.f32 %v738_v36, %v546_v35  ;;  %v555_v32 = vmul.f32 0.5, %v2214_v29 }
 0x158   :  { %v1863_v44 = vpop.eup %1862  ;;  %v741_v45 = vadd.f32 1.0, %v1861_v40  ;;  %v618_v46 = vmul.f32 0.70710677, %v2218_v39  ;;  %v1573_v47 = vpop.f32.mrb[22].mxu0  ;;  %v554_v28 = vmul.f32 0.5, %v2218_v39 }
 0x159   :  { %v740_v51 = vadd.f32 1.0, %v1863_v44  ;;  %1872 = verf.f32 %v619_v41  ;;  %v2224_v43 = vadd.f32 %v1573_v47, %v2146_v48  ;;  %v325_v52 = vpop.f32.mrb[23].mxu0  ;;  %1684 = vmatprep.mubr.f32.mxu1 %v802_v42 }
 0x15a   :  { %1874 = verf.f32 %v618_v46  ;;  %v2228_v54 = vadd.f32 %v2146_v48, %v325_v52  ;;  %1685 = vmatmul.mubr.f32.gmra.mrb[12].mxu1 %v803_v49  ;;  %v805_v63 = vmul.f32 %v741_v45, %v549_v53 }
 0x15b   :  { %v1865_v55 = vpop.eup %1864  ;;  %v621_v56 = vmul.f32 0.70710677, %v2224_v43  ;;  %v804_v57 = vmul.f32 %v740_v51, %v548_v50  ;;  %v557_v46 = vmul.f32 0.5, %v2224_v43 }
 0x15c   :  { %v1867_v59 = vpop.eup %1866  ;;  %v743_v60 = vadd.f32 1.0, %v1865_v55  ;;  %v620_v61 = vmul.f32 0.70710677, %v2228_v54  ;;  %v1576_v62 = vpop.f32.mrb[24].mxu0  ;;  %v556_v42 = vmul.f32 0.5, %v2228_v54 }
 0x15d   :  { %v742_v1 = vadd.f32 1.0, %v1867_v59  ;;  %1876 = verf.f32 %v621_v56  ;;  %v2234_v58 = vadd.f32 %v1576_v62, %v2146_v48  ;;  %v335_v2 = vpop.f32.mrb[25].mxu0  ;;  %1687 = vmatprep.mubr.f32.mxu1 %v804_v57 }
 0x15e   :  { %1878 = verf.f32 %v620_v61  ;;  %v2238_v5 = vadd.f32 %v2146_v48, %v335_v2  ;;  %1688 = vmatmul.mubr.f32.gmra.mrb[14].mxu1 %v805_v63  ;;  %v807_v14 = vmul.f32 %v743_v60, %v551_v3 }
 0x15f   :  { %v1869_v6 = vpop.eup %1868  ;;  %v623_v7 = vmul.f32 0.70710677, %v2234_v58  ;;  %v806_v8 = vmul.f32 %v742_v1, %v550_v0  ;;  %v559_v61 = vmul.f32 0.5, %v2234_v58 }
 0x160   :  { %v1871_v9 = vpop.eup %1870  ;;  %v745_v10 = vadd.f32 1.0, %v1869_v6  ;;  %v622_v11 = vmul.f32 0.70710677, %v2238_v5  ;;  %v1579_v12 = vpop.f32.mrb[26].mxu0  ;;  %v558_v57 = vmul.f32 0.5, %v2238_v5 }
 0x161   :  { %v744_v16 = vadd.f32 1.0, %v1871_v9  ;;  %1880 = verf.f32 %v623_v7  ;;  %v2244_v4 = vadd.f32 %v1579_v12, %v2146_v48  ;;  %v345_v17 = vpop.f32.mrb[27].mxu0  ;;  %1690 = vmatprep.mubr.f32.mxu1 %v806_v8 }
 0x162   :  { %1882 = verf.f32 %v622_v11  ;;  %v2248_v19 = vadd.f32 %v2146_v48, %v345_v17  ;;  %1691 = vmatmul.mubr.f32.gmra.mrb[16].mxu1 %v807_v14  ;;  %v809_v27 = vmul.f32 %v745_v10, %v553_v18 }
 0x163   :  { %v1873_v20 = vpop.eup %1872  ;;  %v625_v21 = vmul.f32 0.70710677, %v2244_v4  ;;  %v808_v22 = vmul.f32 %v744_v16, %v552_v15  ;;  %v561_v11 = vmul.f32 0.5, %v2244_v4 }
 0x164   :  { %v1875_v23 = vpop.eup %1874  ;;  %v747_v24 = vadd.f32 1.0, %v1873_v20  ;;  %v624_v25 = vmul.f32 0.70710677, %v2248_v19  ;;  %v1582_v26 = vpop.f32.mrb[28].mxu0  ;;  %v560_v8 = vmul.f32 0.5, %v2248_v19 }
 0x165   :  { %v746_v30 = vadd.f32 1.0, %v1875_v23  ;;  %1884 = verf.f32 %v625_v21  ;;  %v2254_v13 = vadd.f32 %v1582_v26, %v2146_v48  ;;  %v355_v31 = vpop.f32.mrb[29].mxu0  ;;  %1693 = vmatprep.mubr.f32.mxu1 %v808_v22 }
 0x166   :  { %1886 = verf.f32 %v624_v25  ;;  %v2258_v33 = vadd.f32 %v2146_v48, %v355_v31  ;;  %1694 = vmatmul.mubr.f32.gmra.mrb[18].mxu1 %v809_v27  ;;  %v811_v41 = vmul.f32 %v747_v24, %v555_v32 }
 0x167   :  { %v1877_v34 = vpop.eup %1876  ;;  %v627_v35 = vmul.f32 0.70710677, %v2254_v13  ;;  %v810_v36 = vmul.f32 %v746_v30, %v554_v28  ;;  %v563_v25 = vmul.f32 0.5, %v2254_v13 }
 0x168   :  { %v1879_v37 = vpop.eup %1878  ;;  %v749_v38 = vadd.f32 1.0, %v1877_v34  ;;  %v626_v39 = vmul.f32 0.70710677, %v2258_v33  ;;  %v1585_v40 = vpop.f32.mrb[30].mxu0  ;;  %v562_v22 = vmul.f32 0.5, %v2258_v33 }
 0x169   :  { %v748_v44 = vadd.f32 1.0, %v1879_v37  ;;  %1888 = verf.f32 %v627_v35  ;;  %v2264_v29 = vadd.f32 %v1585_v40, %v2146_v48  ;;  %v365_v45 = vpop.f32.mrb[31].mxu0  ;;  %1696 = vmatprep.mubr.f32.mxu1 %v810_v36 }
 0x16a   :  { %1890 = verf.f32 %v626_v39  ;;  %v2268_v47 = vadd.f32 %v2146_v48, %v365_v45  ;;  %1697 = vmatmul.mubr.f32.gmra.mrb[20].mxu1 %v811_v41  ;;  %v813_v56 = vmul.f32 %v749_v38, %v557_v46 }
 0x16b   :  { %v1881_v49 = vpop.eup %1880  ;;  %v629_v50 = vmul.f32 0.70710677, %v2264_v29  ;;  %v812_v51 = vmul.f32 %v748_v44, %v556_v42  ;;  %v565_v39 = vmul.f32 0.5, %v2264_v29 }
 0x16c   :  { %v1883_v52 = vpop.eup %1882  ;;  %v751_v53 = vadd.f32 1.0, %v1881_v49  ;;  %v628_v54 = vmul.f32 0.70710677, %v2268_v47  ;;  %v1588_v55 = vpop.f32.mrb[32].mxu0  ;;  %v564_v36 = vmul.f32 0.5, %v2268_v47 }
 0x16d   :  { %v750_v59 = vadd.f32 1.0, %v1883_v52  ;;  %1892 = verf.f32 %v629_v50  ;;  %v2274_v43 = vadd.f32 %v1588_v55, %v2146_v48  ;;  %v375_v60 = vpop.f32.mrb[33].mxu0  ;;  %1699 = vmatprep.mubr.f32.mxu1 %v812_v51 }
 0x16e   :  { %1894 = verf.f32 %v628_v54  ;;  %v2278_v62 = vadd.f32 %v2146_v48, %v375_v60  ;;  %1700 = vmatmul.mubr.f32.gmra.mrb[22].mxu1 %v813_v56  ;;  %v815_v7 = vmul.f32 %v751_v53, %v559_v61 }
 0x16f   :  { %v1885_v63 = vpop.eup %1884  ;;  %v631_v0 = vmul.f32 0.70710677, %v2274_v43  ;;  %v814_v1 = vmul.f32 %v750_v59, %v558_v57  ;;  %v567_v54 = vmul.f32 0.5, %v2274_v43 }
 0x170   :  { %v1887_v2 = vpop.eup %1886  ;;  %v753_v3 = vadd.f32 1.0, %v1885_v63  ;;  %v630_v5 = vmul.f32 0.70710677, %v2278_v62  ;;  %v1591_v6 = vpop.f32.mrb[34].mxu0  ;;  %v566_v51 = vmul.f32 0.5, %v2278_v62 }
 0x171   :  { %v752_v9 = vadd.f32 1.0, %v1887_v2  ;;  %1896 = verf.f32 %v631_v0  ;;  %v2284_v58 = vadd.f32 %v1591_v6, %v2146_v48  ;;  %v385_v10 = vpop.f32.mrb[35].mxu0  ;;  %1702 = vmatprep.mubr.f32.mxu1 %v814_v1 }
 0x172   :  { %1898 = verf.f32 %v630_v5  ;;  %v2288_v12 = vadd.f32 %v2146_v48, %v385_v10  ;;  %1703 = vmatmul.mubr.f32.gmra.mrb[24].mxu1 %v815_v7  ;;  %v817_v21 = vmul.f32 %v753_v3, %v561_v11 }
 0x173   :  { %v1889_v14 = vpop.eup %1888  ;;  %v633_v15 = vmul.f32 0.70710677, %v2284_v58  ;;  %v816_v16 = vmul.f32 %v752_v9, %v560_v8  ;;  %v569_v5 = vmul.f32 0.5, %v2284_v58 }
 0x174   :  { %v1891_v17 = vpop.eup %1890  ;;  %v755_v18 = vadd.f32 1.0, %v1889_v14  ;;  %v632_v19 = vmul.f32 0.70710677, %v2288_v12  ;;  %v1594_v20 = vpop.f32.mrb[36].mxu0  ;;  %v568_v1 = vmul.f32 0.5, %v2288_v12 }
 0x175   :  { %v754_v23 = vadd.f32 1.0, %v1891_v17  ;;  %1900 = verf.f32 %v633_v15  ;;  %v2294_v4 = vadd.f32 %v1594_v20, %v2146_v48  ;;  %v395_v24 = vpop.f32.mrb[37].mxu0  ;;  %1705 = vmatprep.mubr.f32.mxu1 %v816_v16 }
 0x176   :  { %1902 = verf.f32 %v632_v19  ;;  %v2298_v26 = vadd.f32 %v2146_v48, %v395_v24  ;;  %1706 = vmatmul.mubr.f32.gmra.mrb[26].mxu1 %v817_v21  ;;  %v819_v35 = vmul.f32 %v755_v18, %v563_v25 }
 0x177   :  { %v1893_v27 = vpop.eup %1892  ;;  %v635_v28 = vmul.f32 0.70710677, %v2294_v4  ;;  %v818_v30 = vmul.f32 %v754_v23, %v562_v22  ;;  %v571_v19 = vmul.f32 0.5, %v2294_v4 }
 0x178   :  { %v1895_v31 = vpop.eup %1894  ;;  %v757_v32 = vadd.f32 1.0, %v1893_v27  ;;  %v634_v33 = vmul.f32 0.70710677, %v2298_v26  ;;  %v1597_v34 = vpop.f32.mrb[38].mxu0  ;;  %v570_v16 = vmul.f32 0.5, %v2298_v26 }
 0x179   :  { %v756_v37 = vadd.f32 1.0, %v1895_v31  ;;  %1904 = verf.f32 %v635_v28  ;;  %v2304_v13 = vadd.f32 %v1597_v34, %v2146_v48  ;;  %v405_v38 = vpop.f32.mrb[39].mxu0  ;;  %1708 = vmatprep.mubr.f32.mxu1 %v818_v30 }
 0x17a   :  { %1906 = verf.f32 %v634_v33  ;;  %v2308_v40 = vadd.f32 %v2146_v48, %v405_v38  ;;  %1709 = vmatmul.mubr.f32.gmra.mrb[28].mxu1 %v819_v35  ;;  %v821_v50 = vmul.f32 %v757_v32, %v565_v39 }
 0x17b   :  { %v1897_v41 = vpop.eup %1896  ;;  %v637_v42 = vmul.f32 0.70710677, %v2304_v13  ;;  %v820_v44 = vmul.f32 %v756_v37, %v564_v36  ;;  %v573_v33 = vmul.f32 0.5, %v2304_v13 }
 0x17c   :  { %v1899_v45 = vpop.eup %1898  ;;  %v759_v46 = vadd.f32 1.0, %v1897_v41  ;;  %v636_v47 = vmul.f32 0.70710677, %v2308_v40  ;;  %v1600_v49 = vpop.f32.mrb[40].mxu0  ;;  %v572_v30 = vmul.f32 0.5, %v2308_v40 }
 0x17d   :  { %v758_v52 = vadd.f32 1.0, %v1899_v45  ;;  %1908 = verf.f32 %v637_v42  ;;  %v2314_v29 = vadd.f32 %v1600_v49, %v2146_v48  ;;  %v415_v53 = vpop.f32.mrb[41].mxu0  ;;  %1711 = vmatprep.mubr.f32.mxu1 %v820_v44 }
 0x17e   :  { %1910 = verf.f32 %v636_v47  ;;  %v2318_v55 = vadd.f32 %v2146_v48, %v415_v53  ;;  %1712 = vmatmul.mubr.f32.gmra.mrb[30].mxu1 %v821_v50  ;;  %v823_v0 = vmul.f32 %v759_v46, %v567_v54 }
 0x17f   :  { %v1901_v56 = vpop.eup %1900  ;;  %v639_v57 = vmul.f32 0.70710677, %v2314_v29  ;;  %v822_v59 = vmul.f32 %v758_v52, %v566_v51  ;;  %v575_v47 = vmul.f32 0.5, %v2314_v29 }
 0x180   :  { %v1903_v60 = vpop.eup %1902  ;;  %v761_v61 = vadd.f32 1.0, %v1901_v56  ;;  %v638_v62 = vmul.f32 0.70710677, %v2318_v55  ;;  %v1603_v63 = vpop.f32.mrb[42].mxu0  ;;  %v574_v44 = vmul.f32 0.5, %v2318_v55 }
 0x181   :  { %v760_v2 = vadd.f32 1.0, %v1903_v60  ;;  %1912 = verf.f32 %v639_v57  ;;  %v2324_v43 = vadd.f32 %v1603_v63, %v2146_v48  ;;  %v425_v3 = vpop.f32.mrb[43].mxu0  ;;  %1714 = vmatprep.mubr.f32.mxu1 %v822_v59 }
 0x182   :  { %1914 = verf.f32 %v638_v62  ;;  %v2328_v6 = vadd.f32 %v2146_v48, %v425_v3  ;;  %1715 = vmatmul.mubr.f32.gmra.mrb[32].mxu1 %v823_v0  ;;  %v825_v15 = vmul.f32 %v761_v61, %v569_v5 }
 0x183   :  { %v1905_v7 = vpop.eup %1904  ;;  %v641_v8 = vmul.f32 0.70710677, %v2324_v43  ;;  %v824_v9 = vmul.f32 %v760_v2, %v568_v1  ;;  %v577_v62 = vmul.f32 0.5, %v2324_v43 }
 0x184   :  { %v1907_v10 = vpop.eup %1906  ;;  %v763_v11 = vadd.f32 1.0, %v1905_v7  ;;  %v640_v12 = vmul.f32 0.70710677, %v2328_v6  ;;  %v1606_v14 = vpop.f32.mrb[44].mxu0  ;;  %v576_v59 = vmul.f32 0.5, %v2328_v6 }
 0x185   :  { %v762_v17 = vadd.f32 1.0, %v1907_v10  ;;  %1916 = verf.f32 %v641_v8  ;;  %v2334_v58 = vadd.f32 %v1606_v14, %v2146_v48  ;;  %v435_v18 = vpop.f32.mrb[45].mxu0  ;;  %1717 = vmatprep.mubr.f32.mxu1 %v824_v9 }
 0x186   :  { %1918 = verf.f32 %v640_v12  ;;  %v2338_v20 = vadd.f32 %v2146_v48, %v435_v18  ;;  %1718 = vmatmul.mubr.f32.gmra.mrb[34].mxu1 %v825_v15  ;;  %v827_v28 = vmul.f32 %v763_v11, %v571_v19 }
 0x187   :  { %v1909_v21 = vpop.eup %1908  ;;  %v643_v22 = vmul.f32 0.70710677, %v2334_v58  ;;  %v826_v23 = vmul.f32 %v762_v17, %v570_v16  ;;  %v579_v12 = vmul.f32 0.5, %v2334_v58 }
 0x188   :  { %v1911_v24 = vpop.eup %1910  ;;  %v765_v25 = vadd.f32 1.0, %v1909_v21  ;;  %v642_v26 = vmul.f32 0.70710677, %v2338_v20  ;;  %v1609_v27 = vpop.f32.mrb[46].mxu0  ;;  %v578_v9 = vmul.f32 0.5, %v2338_v20 }
 0x189   :  { %v764_v31 = vadd.f32 1.0, %v1911_v24  ;;  %1920 = verf.f32 %v643_v22  ;;  %v2344_v4 = vadd.f32 %v1609_v27, %v2146_v48  ;;  %v445_v32 = vpop.f32.mrb[47].mxu0  ;;  %1720 = vmatprep.mubr.f32.mxu1 %v826_v23 }
 0x18a   :  { %1922 = verf.f32 %v642_v26  ;;  %v2348_v34 = vadd.f32 %v2146_v48, %v445_v32  ;;  %1721 = vmatmul.mubr.f32.gmra.mrb[36].mxu1 %v827_v28  ;;  %v829_v42 = vmul.f32 %v765_v25, %v573_v33 }
 0x18b   :  { %v1913_v35 = vpop.eup %1912  ;;  %v645_v36 = vmul.f32 0.70710677, %v2344_v4  ;;  %v828_v37 = vmul.f32 %v764_v31, %v572_v30  ;;  %v581_v26 = vmul.f32 0.5, %v2344_v4 }
 0x18c   :  { %v1915_v38 = vpop.eup %1914  ;;  %v767_v39 = vadd.f32 1.0, %v1913_v35  ;;  %v644_v40 = vmul.f32 0.70710677, %v2348_v34  ;;  %v1612_v41 = vpop.f32.mrb[48].mxu0  ;;  %v580_v23 = vmul.f32 0.5, %v2348_v34 }
 0x18d   :  { %v766_v45 = vadd.f32 1.0, %v1915_v38  ;;  %1924 = verf.f32 %v645_v36  ;;  %v2354_v13 = vadd.f32 %v1612_v41, %v2146_v48  ;;  %v455_v46 = vpop.f32.mrb[49].mxu0  ;;  %1723 = vmatprep.mubr.f32.mxu1 %v828_v37 }
 0x18e   :  { %1926 = verf.f32 %v644_v40  ;;  %v2358_v49 = vadd.f32 %v2146_v48, %v455_v46  ;;  %1724 = vmatmul.mubr.f32.gmra.mrb[38].mxu1 %v829_v42  ;;  %v831_v57 = vmul.f32 %v767_v39, %v575_v47 }
 0x18f   :  { %v1917_v50 = vpop.eup %1916  ;;  %v647_v51 = vmul.f32 0.70710677, %v2354_v13  ;;  %v830_v52 = vmul.f32 %v766_v45, %v574_v44  ;;  %v583_v40 = vmul.f32 0.5, %v2354_v13 }
 0x190   :  { %v1919_v53 = vpop.eup %1918  ;;  %v769_v54 = vadd.f32 1.0, %v1917_v50  ;;  %v646_v55 = vmul.f32 0.70710677, %v2358_v49  ;;  %v1615_v56 = vpop.f32.mrb[50].mxu0  ;;  %v582_v37 = vmul.f32 0.5, %v2358_v49 }
 0x191   :  { %v768_v60 = vadd.f32 1.0, %v1919_v53  ;;  %1928 = verf.f32 %v647_v51  ;;  %v2364_v29 = vadd.f32 %v1615_v56, %v2146_v48  ;;  %v465_v61 = vpop.f32.mrb[51].mxu0  ;;  %1726 = vmatprep.mubr.f32.mxu1 %v830_v52 }
 0x192   :  { %1930 = verf.f32 %v646_v55  ;;  %v2368_v63 = vadd.f32 %v2146_v48, %v465_v61  ;;  %1727 = vmatmul.mubr.f32.gmra.mrb[40].mxu1 %v831_v57  ;;  %v833_v8 = vmul.f32 %v769_v54, %v577_v62 }
 0x193   :  { %v1921_v0 = vpop.eup %1920  ;;  %v649_v1 = vmul.f32 0.70710677, %v2364_v29  ;;  %v832_v2 = vmul.f32 %v768_v60, %v576_v59  ;;  %v585_v55 = vmul.f32 0.5, %v2364_v29 }
 0x194   :  { %v1923_v3 = vpop.eup %1922  ;;  %v771_v5 = vadd.f32 1.0, %v1921_v0  ;;  %v648_v6 = vmul.f32 0.70710677, %v2368_v63  ;;  %v1618_v7 = vpop.f32.mrb[52].mxu0  ;;  %v584_v52 = vmul.f32 0.5, %v2368_v63 }
 0x195   :  { %v770_v10 = vadd.f32 1.0, %v1923_v3  ;;  %1932 = verf.f32 %v649_v1  ;;  %v2374_v43 = vadd.f32 %v1618_v7, %v2146_v48  ;;  %v475_v11 = vpop.f32.mrb[53].mxu0  ;;  %1729 = vmatprep.mubr.f32.mxu1 %v832_v2 }
 0x196   :  { %1934 = verf.f32 %v648_v6  ;;  %v2378_v14 = vadd.f32 %v2146_v48, %v475_v11  ;;  %1730 = vmatmul.mubr.f32.gmra.mrb[42].mxu1 %v833_v8  ;;  %v835_v22 = vmul.f32 %v771_v5, %v579_v12 }
 0x197   :  { %v1925_v15 = vpop.eup %1924  ;;  %v651_v16 = vmul.f32 0.70710677, %v2374_v43  ;;  %v834_v17 = vmul.f32 %v770_v10, %v578_v9  ;;  %v587_v6 = vmul.f32 0.5, %v2374_v43  ;;  %v1960_v43 = vld [vmem:[%s2507_s2] ss:$0 sm:$0xff] }
 0x198   :  { %v1927_v18 = vpop.eup %1926  ;;  %v773_v19 = vadd.f32 1.0, %v1925_v15  ;;  %v650_v20 = vmul.f32 0.70710677, %v2378_v14  ;;  %v1621_v21 = vpop.f32.mrb[54].mxu0  ;;  %v586_v2 = vmul.f32 0.5, %v2378_v14 }
 0x199   :  { %v772_v24 = vadd.f32 1.0, %v1927_v18  ;;  %1936 = verf.f32 %v651_v16  ;;  %v2384_v58 = vadd.f32 %v1621_v21, %v2146_v48  ;;  %v485_v25 = vpop.f32.mrb[55].mxu0  ;;  %1732 = vmatprep.mubr.f32.mxu1 %v834_v17 }
 0x19a   :  { %1938 = verf.f32 %v650_v20  ;;  %v2388_v27 = vadd.f32 %v2146_v48, %v485_v25  ;;  %1733 = vmatmul.mubr.f32.gmra.mrb[44].mxu1 %v835_v22  ;;  %v837_v36 = vmul.f32 %v773_v19, %v581_v26 }
 0x19b   :  { %v1929_v28 = vpop.eup %1928  ;;  %v653_v30 = vmul.f32 0.70710677, %v2384_v58  ;;  %v836_v31 = vmul.f32 %v772_v24, %v580_v23 }
 0x19c   :  { %v1931_v32 = vpop.eup %1930  ;;  %v775_v33 = vadd.f32 1.0, %v1929_v28  ;;  %v652_v34 = vmul.f32 0.70710677, %v2388_v27  ;;  %v1624_v35 = vpop.f32.mrb[56].mxu0  ;;  %v588_v17 = vmul.f32 0.5, %v2388_v27 }
 0x19d   :  { %v774_v38 = vadd.f32 1.0, %v1931_v32  ;;  %1940 = verf.f32 %v653_v30  ;;  %v2394_v4 = vadd.f32 %v1624_v35, %v2146_v48  ;;  %v495_v39 = vpop.f32.mrb[57].mxu0  ;;  %1735 = vmatprep.mubr.f32.mxu1 %v836_v31 }
 0x19e   :  { %1942 = verf.f32 %v652_v34  ;;  %v2398_v41 = vadd.f32 %v2146_v48, %v495_v39  ;;  %1736 = vmatmul.mubr.f32.gmra.mrb[46].mxu1 %v837_v36  ;;  %v839_v51 = vmul.f32 %v775_v33, %v583_v40 }
 0x19f   :  { %v1933_v42 = vpop.eup %1932  ;;  %v655_v44 = vmul.f32 0.70710677, %v2394_v4  ;;  %v838_v45 = vmul.f32 %v774_v38, %v582_v37  ;;  %v591_v32 = vmul.f32 0.5, %v2394_v4 }
 0x1a0   :  { %v1935_v46 = vpop.eup %1934  ;;  %v777_v47 = vadd.f32 1.0, %v1933_v42  ;;  %v654_v49 = vmul.f32 0.70710677, %v2398_v41  ;;  %v1627_v50 = vpop.f32.mrb[58].mxu0  ;;  %v590_v30 = vmul.f32 0.5, %v2398_v41 }
 0x1a1   :  { %v776_v53 = vadd.f32 1.0, %v1935_v46  ;;  %1944 = verf.f32 %v655_v44  ;;  %v2404_v13 = vadd.f32 %v1627_v50, %v2146_v48  ;;  %v505_v54 = vpop.f32.mrb[59].mxu0  ;;  %1738 = vmatprep.mubr.f32.mxu1 %v838_v45 }
 0x1a2   :  { %1946 = verf.f32 %v654_v49  ;;  %v506_v56 = vadd.f32 %v2146_v48, %v505_v54  ;;  %1739 = vmatmul.mubr.f32.gmra.mrb[48].mxu1 %v839_v51  ;;  %v841_v1 = vmul.f32 %v777_v47, %v585_v55 }
 0x1a3   :  { %v1937_v57 = vpop.eup %1936  ;;  %v657_v59 = vmul.f32 0.70710677, %v2404_v13  ;;  %v840_v60 = vmul.f32 %v776_v53, %v584_v52  ;;  %v593_v39 = vmul.f32 0.5, %v2404_v13 }
 0x1a4   :  { %v1939_v61 = vpop.eup %1938  ;;  %v779_v62 = vadd.f32 1.0, %v1937_v57  ;;  %v656_v63 = vmul.f32 0.70710677, %v506_v56  ;;  %v1630_v0 = vpop.f32.mrb[60].mxu0  ;;  %v592_v37 = vmul.f32 0.5, %v506_v56 }
 0x1a5   :  { %v778_v3 = vadd.f32 1.0, %v1939_v61  ;;  %1948 = verf.f32 %v657_v59  ;;  %v521_v5 = vadd.f32 %v1630_v0, %v2146_v48  ;;  %v515_v29 = vpop.f32.mrb[61].mxu0  ;;  %1741 = vmatprep.mubr.f32.mxu1 %v840_v60  ;;  %v2424_v59 = vld [vmem:[%s2509_s4] ss:$0 sm:$0xff]  ;;  %s2060_s4 = smov [#allocation8]  }
 0x1a6   :  { %1950 = verf.f32 %v656_v63  ;;  %v516_v7 = vadd.f32 %v2146_v48, %v515_v29  ;;  %1742 = vmatmul.mubr.f32.gmra.mrb[50].mxu1 %v841_v1  ;;  %v843_v14 = vmul.f32 %v779_v62, %v587_v6  ;;  %v589_v48 = vmul.f32 0.5, %v2384_v58  ;;  %s1331_s10 = sshll.u32 %s2060_s4, 4  ;;  %s1332_s10 = int_to_ptr.vmem [resolvable:$true] %s1331_s10 }
 0x1a7   :  { %v1941_v8 = vpop.eup %1940  ;;  %v659_v9 = vmul.f32 0.70710677, %v521_v5  ;;  %v842_v10 = vmul.f32 %v778_v3, %v586_v2  ;;  %v595_v47 = vmul.f32 0.5, %v521_v5  ;;  %s2027_s11 = scalar_lea.vmem %s1332_s10, 8192  ;;  %p2032_p11 = scmp.lt.s32.totalorder %s1332_s10, %s1332_s10 }
 0x1a8   :  { %v1943_v11 = vpop.eup %1942  ;;  %v781_v12 = vadd.f32 1.0, %v1941_v8  ;;  %v658_v15 = vmul.f32 0.70710677, %v516_v7  ;;  %v1633_v16 = vpop.f32.mrb[62].mxu0  ;;  %v594_v46 = vmul.f32 0.5, %v516_v7  ;;  %p2028_p10 = scmp.ne.s32.totalorder %s1332_s10, %s2027_s11  ;;  %p2033_p12 = scmp.lt.s32.totalorder %s2027_s11, %s2027_s11 }
 0x1a9   :  { %v780_v18 = vadd.f32 1.0, %v1943_v11  ;;  %1952 = verf.f32 %v659_v9  ;;  %v531_v19 = vadd.f32 %v1960_v43, %v1633_v16  ;;  %v525_v20 = vpop.f32.mrb[63].mxu0  ;;  %1744 = vmatprep.mubr.f32.mxu1 %v842_v10 }
 0x1aa   :  { %1954 = verf.f32 %v658_v15  ;;  %v526_v21 = vadd.f32 %v1960_v43, %v525_v20  ;;  %1745 = vmatmul.mubr.f32.gmra.mrb[52].mxu1 %v843_v14  ;;  %v845_v28 = vmul.f32 %v781_v12, %v589_v48  ;;  %p2034_p13 = por %p2033_p12, %p2032_p11 }
 0x1ab   :  { %v1945_v22 = vpop.eup %1944  ;;  %v661_v23 = vmul.f32 0.70710677, %v531_v19  ;;  %v844_v24 = vmul.f32 %v780_v18, %v588_v17  ;;  %v597_v13 = vmul.f32 0.5, %v531_v19 }
 0x1ac   :  { %v1947_v25 = vpop.eup %1946  ;;  %v783_v26 = vadd.f32 1.0, %v1945_v22  ;;  %v660_v27 = vmul.f32 0.70710677, %v526_v21  ;;  %v596_v54 = vmul.f32 0.5, %v526_v21  ;;  %p2035_p0 = pnand %p2034_p13, %p2028_p10 }
 0x1ad   :  { %v782_v31 = vadd.f32 1.0, %v1947_v25  ;;  %1956 = verf.f32 %v661_v23  ;;  %1747 = vmatprep.mubr.f32.mxu1 %v844_v24 }
 0x1ae   :  { %1958 = verf.f32 %v660_v27  ;;  %1748 = vmatmul.mubr.f32.gmra.mrb[54].mxu1 %v845_v28  ;;  %v847_v36 = vmul.f32 %v783_v26, %v591_v32 }
 0x1af   :  { %v1949_v58 = vpop.eup %1948  ;;  %v846_v33 = vmul.f32 %v782_v31, %v590_v30 }
 0x1b0   :  { %v1951_v34 = vpop.eup %1950  ;;  %v785_v35 = vadd.f32 1.0, %v1949_v58 }
 0x1b1   :  { %v784_v38 = vadd.f32 1.0, %v1951_v34  ;;  %1750 = vmatprep.mubr.f32.mxu1 %v846_v33 }
 0x1b2   :  { %1751 = vmatmul.mubr.f32.gmra.mrb[56].mxu1 %v847_v36  ;;  %v849_v45 = vmul.f32 %v785_v35, %v593_v39 }
 0x1b3   :  { %v1953_v40 = vpop.eup %1952  ;;  %v848_v41 = vmul.f32 %v784_v38, %v592_v37 }
 0x1b4   :  { %v1955_v42 = vpop.eup %1954  ;;  %v787_v44 = vadd.f32 1.0, %v1953_v40 }
 0x1b5   :  { %v786_v4 = vadd.f32 1.0, %v1955_v42  ;;  %1753 = vmatprep.mubr.f32.mxu1 %v848_v41 }
 0x1b6   :  { %1754 = vmatmul.mubr.f32.gmra.mrb[58].mxu1 %v849_v45  ;;  %v851_v53 = vmul.f32 %v787_v44, %v595_v47 }
 0x1b7   :  { %v1957_v49 = vpop.eup %1956  ;;  %v850_v50 = vmul.f32 %v786_v4, %v594_v46 }
 0x1b8   :  { %v1959_v51 = vpop.eup %1958  ;;  %v789_v52 = vadd.f32 1.0, %v1957_v49 }
 0x1b9   :  { %v788_v55 = vadd.f32 1.0, %v1959_v51  ;;  %1756 = vmatprep.mubr.f32.mxu1 %v850_v50 }
 0x1ba   :  { %1757 = vmatmul.mubr.f32.gmra.mrb[60].mxu1 %v851_v53  ;;  %v853_v57 = vmul.f32 %v789_v52, %v597_v13 }
 0x1bb   :  { %v852_v56 = vmul.f32 %v788_v55, %v596_v54 }
 0x1bd   :  { %1759 = vmatprep.mubr.f32.mxu1 %v852_v56 }
 0x1be   :  { %1760 = vmatmul.mubr.f32.gmra.mrb[62].mxu1 %v853_v57 }
 0x215   :  { %v1668_v60 = vpop.f32.mrb[0].mxu1 }
 0x216   :  { %v949_v61 = vadd.f32 %v1668_v60, %v2424_v59  ;;  %v943_v62 = vpop.f32.mrb[1].mxu1 }
 0x217   :  { %v944_v63 = vadd.f32 %v2424_v59, %v943_v62 }
 0x218   :  { %1263 = vst [vmem:[#allocation8 + $0x8] sm:$0xff] %v949_v61 }
 0x219   :  { %1262 = vst [vmem:[#allocation8] sm:$0xff] %v944_v63  ;;  %v1671_v0 = vpop.f32.mrb[2].mxu1 }
 0x21a   :  { %v959_v1 = vadd.f32 %v1671_v0, %v2424_v59  ;;  %v953_v2 = vpop.f32.mrb[3].mxu1 }
 0x21b   :  { %v954_v3 = vadd.f32 %v2424_v59, %v953_v2 }
 0x21c   :  { %1265 = vst [vmem:[#allocation8 + $0x18] sm:$0xff] %v959_v1 }
 0x21d   :  { %1264 = vst [vmem:[#allocation8 + $0x10] sm:$0xff] %v954_v3  ;;  %v1674_v5 = vpop.f32.mrb[4].mxu1 }
 0x21e   :  { %v969_v29 = vadd.f32 %v1674_v5, %v2424_v59  ;;  %v963_v6 = vpop.f32.mrb[5].mxu1 }
 0x21f   :  { %v964_v7 = vadd.f32 %v2424_v59, %v963_v6 }
 0x220   :  { %1267 = vst [vmem:[#allocation8 + $0x28] sm:$0xff] %v969_v29 }
 0x221   :  { %1266 = vst [vmem:[#allocation8 + $0x20] sm:$0xff] %v964_v7  ;;  %v1677_v8 = vpop.f32.mrb[6].mxu1 }
 0x222   :  { %v979_v9 = vadd.f32 %v1677_v8, %v2424_v59  ;;  %v973_v10 = vpop.f32.mrb[7].mxu1 }
 0x223   :  { %v974_v11 = vadd.f32 %v2424_v59, %v973_v10 }
 0x224   :  { %1269 = vst [vmem:[#allocation8 + $0x38] sm:$0xff] %v979_v9 }
 0x225   :  { %1268 = vst [vmem:[#allocation8 + $0x30] sm:$0xff] %v974_v11  ;;  %v1680_v12 = vpop.f32.mrb[8].mxu1 }
 0x226   :  { %v989_v15 = vadd.f32 %v1680_v12, %v2424_v59  ;;  %v983_v16 = vpop.f32.mrb[9].mxu1 }
 0x227   :  { %v984_v14 = vadd.f32 %v2424_v59, %v983_v16 }
 0x228   :  { %1271 = vst [vmem:[#allocation8 + $0x48] sm:$0xff] %v989_v15 }
 0x229   :  { %1270 = vst [vmem:[#allocation8 + $0x40] sm:$0xff] %v984_v14  ;;  %v1683_v17 = vpop.f32.mrb[10].mxu1 }
 0x22a   :  { %v999_v18 = vadd.f32 %v1683_v17, %v2424_v59  ;;  %v993_v43 = vpop.f32.mrb[11].mxu1 }
 0x22b   :  { %v994_v19 = vadd.f32 %v2424_v59, %v993_v43 }
 0x22c   :  { %1273 = vst [vmem:[#allocation8 + $0x58] sm:$0xff] %v999_v18 }
 0x22d   :  { %1272 = vst [vmem:[#allocation8 + $0x50] sm:$0xff] %v994_v19  ;;  %v1686_v20 = vpop.f32.mrb[12].mxu1 }
 0x22e   :  { %v1009_v48 = vadd.f32 %v1686_v20, %v2424_v59  ;;  %v1003_v21 = vpop.f32.mrb[13].mxu1 }
 0x22f   :  { %v1004_v22 = vadd.f32 %v2424_v59, %v1003_v21 }
 0x230   :  { %1275 = vst [vmem:[#allocation8 + $0x68] sm:$0xff] %v1009_v48 }
 0x231   :  { %1274 = vst [vmem:[#allocation8 + $0x60] sm:$0xff] %v1004_v22  ;;  %v1689_v23 = vpop.f32.mrb[14].mxu1 }
 0x232   :  { %v1019_v24 = vadd.f32 %v1689_v23, %v2424_v59  ;;  %v1013_v25 = vpop.f32.mrb[15].mxu1 }
 0x233   :  { %v1014_v26 = vadd.f32 %v2424_v59, %v1013_v25 }
 0x234   :  { %1277 = vst [vmem:[#allocation8 + $0x78] sm:$0xff] %v1019_v24 }
 0x235   :  { %1276 = vst [vmem:[#allocation8 + $0x70] sm:$0xff] %v1014_v26  ;;  %v1692_v27 = vpop.f32.mrb[16].mxu1 }
 0x236   :  { %v1029_v28 = vadd.f32 %v1692_v27, %v2424_v59  ;;  %v1023_v30 = vpop.f32.mrb[17].mxu1 }
 0x237   :  { %v1024_v31 = vadd.f32 %v2424_v59, %v1023_v30 }
 0x238   :  { %1279 = vst [vmem:[#allocation8 + $0x88] sm:$0xff] %v1029_v28 }
 0x239   :  { %1278 = vst [vmem:[#allocation8 + $0x80] sm:$0xff] %v1024_v31  ;;  %v1695_v32 = vpop.f32.mrb[18].mxu1 }
 0x23a   :  { %v1039_v58 = vadd.f32 %v1695_v32, %v2424_v59  ;;  %v1033_v33 = vpop.f32.mrb[19].mxu1 }
 0x23b   :  { %v1034_v34 = vadd.f32 %v2424_v59, %v1033_v33 }
 0x23c   :  { %1281 = vst [vmem:[#allocation8 + $0x98] sm:$0xff] %v1039_v58 }
 0x23d   :  { %1280 = vst [vmem:[#allocation8 + $0x90] sm:$0xff] %v1034_v34  ;;  %v1698_v35 = vpop.f32.mrb[20].mxu1 }
 0x23e   :  { %v1049_v36 = vadd.f32 %v1698_v35, %v2424_v59  ;;  %v1043_v37 = vpop.f32.mrb[21].mxu1 }
 0x23f   :  { %v1044_v38 = vadd.f32 %v2424_v59, %v1043_v37 }
 0x240   :  { %1283 = vst [vmem:[#allocation8 + $0xa8] sm:$0xff] %v1049_v36 }
 0x241   :  { %1282 = vst [vmem:[#allocation8 + $0xa0] sm:$0xff] %v1044_v38  ;;  %v1701_v39 = vpop.f32.mrb[22].mxu1 }
 0x242   :  { %v1059_v40 = vadd.f32 %v1701_v39, %v2424_v59  ;;  %v1053_v41 = vpop.f32.mrb[23].mxu1 }
 0x243   :  { %v1054_v42 = vadd.f32 %v2424_v59, %v1053_v41 }
 0x244   :  { %1285 = vst [vmem:[#allocation8 + $0xb8] sm:$0xff] %v1059_v40 }
 0x245   :  { %1284 = vst [vmem:[#allocation8 + $0xb0] sm:$0xff] %v1054_v42  ;;  %v1704_v44 = vpop.f32.mrb[24].mxu1 }
 0x246   :  { %v1069_v45 = vadd.f32 %v1704_v44, %v2424_v59  ;;  %v1063_v46 = vpop.f32.mrb[25].mxu1 }
 0x247   :  { %v1064_v4 = vadd.f32 %v2424_v59, %v1063_v46 }
 0x248   :  { %1287 = vst [vmem:[#allocation8 + $0xc8] sm:$0xff] %v1069_v45 }
 0x249   :  { %1286 = vst [vmem:[#allocation8 + $0xc0] sm:$0xff] %v1064_v4  ;;  %v1707_v47 = vpop.f32.mrb[26].mxu1 }
 0x24a   :  { %v1079_v49 = vadd.f32 %v1707_v47, %v2424_v59  ;;  %v1073_v50 = vpop.f32.mrb[27].mxu1 }
 0x24b   :  { %v1074_v51 = vadd.f32 %v2424_v59, %v1073_v50 }
 0x24c   :  { %1289 = vst [vmem:[#allocation8 + $0xd8] sm:$0xff] %v1079_v49 }
 0x24d   :  { %1288 = vst [vmem:[#allocation8 + $0xd0] sm:$0xff] %v1074_v51  ;;  %v1710_v52 = vpop.f32.mrb[28].mxu1 }
 0x24e   :  { %v1089_v53 = vadd.f32 %v1710_v52, %v2424_v59  ;;  %v1083_v54 = vpop.f32.mrb[29].mxu1 }
 0x24f   :  { %v1084_v55 = vadd.f32 %v2424_v59, %v1083_v54 }
 0x250   :  { %1291 = vst [vmem:[#allocation8 + $0xe8] sm:$0xff] %v1089_v53 }
 0x251   :  { %1290 = vst [vmem:[#allocation8 + $0xe0] sm:$0xff] %v1084_v55  ;;  %v1713_v13 = vpop.f32.mrb[30].mxu1 }
 0x252   :  { %v1099_v56 = vadd.f32 %v1713_v13, %v2424_v59  ;;  %v1093_v57 = vpop.f32.mrb[31].mxu1 }
 0x253   :  { %v1094_v60 = vadd.f32 %v2424_v59, %v1093_v57 }
 0x254   :  { %1293 = vst [vmem:[#allocation8 + $0xf8] sm:$0xff] %v1099_v56 }
 0x255   :  { %1292 = vst [vmem:[#allocation8 + $0xf0] sm:$0xff] %v1094_v60  ;;  %v1716_v61 = vpop.f32.mrb[32].mxu1 }
 0x256   :  { %v1109_v62 = vadd.f32 %v1716_v61, %v2424_v59  ;;  %v1103_v63 = vpop.f32.mrb[33].mxu1 }
 0x257   :  { %v1104_v0 = vadd.f32 %v2424_v59, %v1103_v63 }
 0x258   :  { %1295 = vst [vmem:[#allocation8 + $0x108] sm:$0xff] %v1109_v62 }
 0x259   :  { %1294 = vst [vmem:[#allocation8 + $0x100] sm:$0xff] %v1104_v0  ;;  %v1719_v1 = vpop.f32.mrb[34].mxu1 }
 0x25a   :  { %v1119_v2 = vadd.f32 %v1719_v1, %v2424_v59  ;;  %v1113_v3 = vpop.f32.mrb[35].mxu1 }
 0x25b   :  { %v1114_v5 = vadd.f32 %v2424_v59, %v1113_v3 }
 0x25c   :  { %1297 = vst [vmem:[#allocation8 + $0x118] sm:$0xff] %v1119_v2 }
 0x25d   :  { %1296 = vst [vmem:[#allocation8 + $0x110] sm:$0xff] %v1114_v5  ;;  %v1722_v29 = vpop.f32.mrb[36].mxu1 }
 0x25e   :  { %v1129_v6 = vadd.f32 %v1722_v29, %v2424_v59  ;;  %v1123_v7 = vpop.f32.mrb[37].mxu1 }
 0x25f   :  { %v1124_v8 = vadd.f32 %v2424_v59, %v1123_v7 }
 0x260   :  { %1299 = vst [vmem:[#allocation8 + $0x128] sm:$0xff] %v1129_v6 }
 0x261   :  { %1298 = vst [vmem:[#allocation8 + $0x120] sm:$0xff] %v1124_v8  ;;  %v1725_v9 = vpop.f32.mrb[38].mxu1 }
 0x262   :  { %v1139_v10 = vadd.f32 %v1725_v9, %v2424_v59  ;;  %v1133_v11 = vpop.f32.mrb[39].mxu1 }
 0x263   :  { %v1134_v12 = vadd.f32 %v2424_v59, %v1133_v11 }
 0x264   :  { %1301 = vst [vmem:[#allocation8 + $0x138] sm:$0xff] %v1139_v10 }
 0x265   :  { %1300 = vst [vmem:[#allocation8 + $0x130] sm:$0xff] %v1134_v12  ;;  %v1728_v15 = vpop.f32.mrb[40].mxu1 }
 0x266   :  { %v1149_v16 = vadd.f32 %v1728_v15, %v2424_v59  ;;  %v1143_v14 = vpop.f32.mrb[41].mxu1 }
 0x267   :  { %v1144_v17 = vadd.f32 %v2424_v59, %v1143_v14 }
 0x268   :  { %1303 = vst [vmem:[#allocation8 + $0x148] sm:$0xff] %v1149_v16 }
 0x269   :  { %1302 = vst [vmem:[#allocation8 + $0x140] sm:$0xff] %v1144_v17  ;;  %v1731_v18 = vpop.f32.mrb[42].mxu1 }
 0x26a   :  { %v1159_v43 = vadd.f32 %v1731_v18, %v2424_v59  ;;  %v1153_v19 = vpop.f32.mrb[43].mxu1 }
 0x26b   :  { %v1154_v20 = vadd.f32 %v2424_v59, %v1153_v19 }
 0x26c   :  { %1305 = vst [vmem:[#allocation8 + $0x158] sm:$0xff] %v1159_v43 }
 0x26d   :  { %1304 = vst [vmem:[#allocation8 + $0x150] sm:$0xff] %v1154_v20  ;;  %v1734_v48 = vpop.f32.mrb[44].mxu1 }
 0x26e   :  { %v1169_v21 = vadd.f32 %v1734_v48, %v2424_v59  ;;  %v1163_v22 = vpop.f32.mrb[45].mxu1 }
 0x26f   :  { %v1164_v23 = vadd.f32 %v2424_v59, %v1163_v22 }
 0x270   :  { %1307 = vst [vmem:[#allocation8 + $0x168] sm:$0xff] %v1169_v21 }
 0x271   :  { %1306 = vst [vmem:[#allocation8 + $0x160] sm:$0xff] %v1164_v23  ;;  %v1737_v24 = vpop.f32.mrb[46].mxu1 }
 0x272   :  { %v1179_v25 = vadd.f32 %v1737_v24, %v2424_v59  ;;  %v1173_v26 = vpop.f32.mrb[47].mxu1 }
 0x273   :  { %v1174_v27 = vadd.f32 %v2424_v59, %v1173_v26 }
 0x274   :  { %1309 = vst [vmem:[#allocation8 + $0x178] sm:$0xff] %v1179_v25 }
 0x275   :  { %1308 = vst [vmem:[#allocation8 + $0x170] sm:$0xff] %v1174_v27  ;;  %v1740_v28 = vpop.f32.mrb[48].mxu1 }
 0x276   :  { %v1189_v30 = vadd.f32 %v1740_v28, %v2424_v59  ;;  %v1183_v31 = vpop.f32.mrb[49].mxu1 }
 0x277   :  { %v1184_v32 = vadd.f32 %v2424_v59, %v1183_v31 }
 0x278   :  { %1311 = vst [vmem:[#allocation8 + $0x188] sm:$0xff] %v1189_v30 }
 0x279   :  { %1310 = vst [vmem:[#allocation8 + $0x180] sm:$0xff] %v1184_v32  ;;  %v1743_v58 = vpop.f32.mrb[50].mxu1 }
 0x27a   :  { %v1199_v33 = vadd.f32 %v1743_v58, %v2424_v59  ;;  %v1193_v34 = vpop.f32.mrb[51].mxu1 }
 0x27b   :  { %v1194_v35 = vadd.f32 %v2424_v59, %v1193_v34 }
 0x27c   :  { %1313 = vst [vmem:[#allocation8 + $0x198] sm:$0xff] %v1199_v33 }
 0x27d   :  { %1312 = vst [vmem:[#allocation8 + $0x190] sm:$0xff] %v1194_v35  ;;  %v1746_v36 = vpop.f32.mrb[52].mxu1 }
 0x27e   :  { %v1209_v37 = vadd.f32 %v1746_v36, %v2424_v59  ;;  %v1203_v38 = vpop.f32.mrb[53].mxu1 }
 0x27f   :  { %v1204_v39 = vadd.f32 %v2424_v59, %v1203_v38 }
 0x280   :  { %1315 = vst [vmem:[#allocation8 + $0x1a8] sm:$0xff] %v1209_v37 }
 0x281   :  { %1314 = vst [vmem:[#allocation8 + $0x1a0] sm:$0xff] %v1204_v39  ;;  %v1749_v40 = vpop.f32.mrb[54].mxu1 }
 0x282   :  { %v1219_v41 = vadd.f32 %v1749_v40, %v2424_v59  ;;  %v1213_v42 = vpop.f32.mrb[55].mxu1 }
 0x283   :  { %v1214_v44 = vadd.f32 %v2424_v59, %v1213_v42 }
 0x284   :  { %1317 = vst [vmem:[#allocation8 + $0x1b8] sm:$0xff] %v1219_v41 }
 0x285   :  { %1316 = vst [vmem:[#allocation8 + $0x1b0] sm:$0xff] %v1214_v44  ;;  %v1752_v45 = vpop.f32.mrb[56].mxu1 }
 0x286   :  { %v1229_v46 = vadd.f32 %v1752_v45, %v2424_v59  ;;  %v1223_v4 = vpop.f32.mrb[57].mxu1 }
 0x287   :  { %v1224_v47 = vadd.f32 %v2424_v59, %v1223_v4 }
 0x288   :  { %1319 = vst [vmem:[#allocation8 + $0x1c8] sm:$0xff] %v1229_v46 }
 0x289   :  { %1318 = vst [vmem:[#allocation8 + $0x1c0] sm:$0xff] %v1224_v47  ;;  %v1755_v49 = vpop.f32.mrb[58].mxu1 }
 0x28a   :  { %v1239_v50 = vadd.f32 %v1755_v49, %v2424_v59  ;;  %v1233_v51 = vpop.f32.mrb[59].mxu1 }
 0x28b   :  { %v1234_v52 = vadd.f32 %v2424_v59, %v1233_v51 }
 0x28c   :  { %1321 = vst [vmem:[#allocation8 + $0x1d8] sm:$0xff] %v1239_v50 }
 0x28d   :  { %1320 = vst [vmem:[#allocation8 + $0x1d0] sm:$0xff] %v1234_v52  ;;  %v1758_v53 = vpop.f32.mrb[60].mxu1 }
 0x28e   :  { %v1249_v54 = vadd.f32 %v1758_v53, %v2424_v59  ;;  %v1243_v55 = vpop.f32.mrb[61].mxu1 }
 0x28f   :  { %v1244_v13 = vadd.f32 %v2424_v59, %v1243_v55 }
 0x290   :  { %1323 = vst [vmem:[#allocation8 + $0x1e8] sm:$0xff] %v1249_v54 }
 0x291   :  { %1322 = vst [vmem:[#allocation8 + $0x1e0] sm:$0xff] %v1244_v13  ;;  %v1761_v56 = vpop.f32.mrb[62].mxu1 }
 0x292   :  { %v1259_v57 = vadd.f32 %v1761_v56, %v2424_v59  ;;  %v1253_v60 = vpop.f32.mrb[63].mxu1 }
 0x293   :  { %v1254_v61 = vadd.f32 %v2424_v59, %v1253_v60 }
 0x294   :  { %1325 = vst [vmem:[#allocation8 + $0x1f8] sm:$0xff] %v1259_v57 }
 0x295   :  { %1324 = vst [vmem:[#allocation8 + $0x1f0] sm:$0xff] %v1254_v61 }
 0x296   :  { %2038 = shalt.err (!%p2035_p0)
}
 0x297   :  { %s2039_s14 = scalar_lea.hbm %s2510_s5, 8192 }
 0x298   :  { %p2040_p1 = scmp.ne.s32.totalorder %s2510_s5, %s2039_s14  ;;  %p2043_p2 = scmp.lt.u32.totalorder %s2039_s14, %s2510_s5 }
 0x29a   :  { %p2045_p3 = pnand %p2043_p2, %p2040_p1 }
 0x29c   :  { %2048 = shalt.err (!%p2045_p3)
}
 0x29d   :  { %1337 = dma.vmem_to_hbm [thread:$0]  %s1332_s10, 8192, %s2510_s5, [#allocation4], %s2057_s30, %s2057_s30, %s2058_s6  }
 0x29e   :  { %2053 = dma.done.wait [#allocation4], 8192  }
 0x29f   :  { %2054 = vsyncadd [#allocation4], 4294959104 }
 0x2a0   :  { %1341 = vsyncpa [#allocation3], 1 }
 0x2a1   :  { %1342 = vsyncpa [#allocation6], 1 }
 0x2a2   :  { %1343 = vsyncpa [#allocation4], 1 }

</bundles_post_ra>
